<compile_context>
chip_gen: v5e
topology: v5e:2x2
jax: 0.10.0
libtpu: 0.0.40
codegen_flags: <defaults>
</compile_context>

<pallas_src>
import functools

import jax
import jax.numpy as jnp
from jax.experimental import pallas as pl
from jax.experimental.pallas import tpu as pltpu


def _h_sigmoid_kernel(x_ref, o_ref, *, scale):
    x = x_ref[...]
    # ReLU6(x + 3) * (h_max / 6). Python-float constants are weakly typed, so
    # bf16 inputs compute in bf16 (v6e/v7x have bf16 VALUs) and f32 stays f32.
    o_ref[...] = (jnp.clip(x + 3.0, 0.0, 6.0) * scale).astype(o_ref.dtype)


def _sublane_min(itemsize: int) -> int:
    # Packed-sublane minimum for the second-to-last block dim.
    return {1: 32, 2: 16, 4: 8}.get(itemsize, 8)


def _choose_lane_width(total: int, max_lane: int = 4096):
    """Largest multiple of 128 (<= max_lane) that divides `total`, or None."""
    if total == 0 or total % 128 != 0:
        return None
    t = total // 128
    for d in range(min(max_lane // 128, t), 0, -1):
        if t % d == 0:
            return 128 * d
    return 128


def _tpu_block_config():
    """(target_block_bytes, vmem_limit_bytes) for the current TPU generation."""
    try:
        kind = jax.devices()[0].device_kind.lower()
    except Exception:
        kind = ""
    if "v5 lite" in kind or "v5lite" in kind or "v5e" in kind:
        # v5e: ~820 GB/s HBM, 16 MiB scoped-VMEM default (128 MiB physical).
        return 4 * 1024 * 1024, 32 * 1024 * 1024
    if "v7" in kind or "tpu7" in kind:
        # v7x: ~3.2 TB/s HBM but only 64 MiB physical VMEM; leave headroom for
        # Mosaic's internal scratch.
        return 8 * 1024 * 1024, 44 * 1024 * 1024
    # v6e (and default): 1.4 TB/s HBM, 128 MiB physical VMEM.
    return 8 * 1024 * 1024, 48 * 1024 * 1024


def _choose_row_tile(rows, cols, itemsize, target_block_bytes, min_steps=4):
    """Row tile: ~target_block_bytes, >= min_steps grid steps, prefer tm | rows."""
    sub_min = _sublane_min(itemsize)
    row_bytes = max(cols * itemsize, 1)
    # Upper bound from the per-block byte budget.
    tm = max(sub_min, (target_block_bytes // row_bytes) // sub_min * sub_min)
    tm = min(tm, rows)
    # Keep the grid >= min_steps (pipeline overlap + v7x megacore sharding)
    # whenever rows allows it.
    grid_cap = (rows // min_steps) // sub_min * sub_min
    if grid_cap >= sub_min:
        tm = min(tm, grid_cap)
    tm = max(tm, min(rows, sub_min))
    # Prefer a tm that divides rows exactly so the last block is not a
    # mostly-empty ragged block (only search a little downward).
    if 0 < tm < rows and rows % tm != 0:
        cand = tm
        while cand >= max(sub_min, tm // 2):
            if rows % cand == 0:
                tm = cand
                break
            cand -= sub_min
    return tm


def h_sigmoid(x, h_max: float = 1.0, *, min_pallas_bytes: int = 512 * 1024,
              target_block_bytes=None, vmem_limit_bytes=None,
              donate_input: bool = False):
    """Applies hard-sigmoid elementwise (any rank / layout; result matches input)."""
    orig_shape = x.shape
    orig_dtype = x.dtype
    scale = float(h_max) / 6.0
    total = x.size
    itemsize = jnp.dtype(orig_dtype).itemsize

    # Small-input bypass: fixed pallas_call dispatch + pipeline prologue would
    # dominate, and plain XLA can fuse this into its producer/consumer.
    if total == 0 or total * itemsize < min_pallas_bytes:
        return (jnp.clip(x + 3.0, 0.0, 6.0) * scale).astype(orig_dtype)

    default_block, default_vmem = _tpu_block_config()
    if target_block_bytes is None:
        target_block_bytes = default_block
    if vmem_limit_bytes is None:
        vmem_limit_bytes = default_vmem

    # Lane-dense flatten. If the element count is not a multiple of 128, pad
    # the flat buffer (cheap, contiguous, wrapper-side) rather than streaming
    # with a sub-128 lane width.
    cols = _choose_lane_width(total)
    pad = 0
    if cols is None:
        padded_total = ((total + 127) // 128) * 128
        pad = padded_total - total
        x2_flat = jnp.pad(x.reshape(-1), (0, pad))
        cols = _choose_lane_width(padded_total)
        x2 = x2_flat.reshape(padded_total // cols, cols)
    else:
        x2 = x.reshape(total // cols, cols)
    rows = x2.shape[0]

    tm = _choose_row_tile(rows, cols, itemsize, target_block_bytes)
    grid = (pl.cdiv(rows, tm),)
    kernel = functools.partial(_h_sigmoid_kernel, scale=scale)

    call_kwargs = {}
    if donate_input:
        # Alias the single input buffer to the output: same HBM traffic, but
        # half the HBM footprint for large activation maps. Only valid when
        # the caller no longer needs x.
        call_kwargs["input_output_aliases"] = {0: 0}

    out2 = pl.pallas_call(
        kernel,
        out_shape=jax.ShapeDtypeStruct((rows, cols), orig_dtype),
        grid_spec=pltpu.PrefetchScalarGridSpec(
            num_scalar_prefetch=0,
            grid=grid,
            in_specs=[pl.BlockSpec((tm, cols), lambda i: (i, 0))],
            out_specs=pl.BlockSpec((tm, cols), lambda i: (i, 0)),
        ),
        compiler_params=pltpu.CompilerParams(
            dimension_semantics=("parallel",),
            vmem_limit_bytes=vmem_limit_bytes,
        ),
        **call_kwargs,
    )(x2)

    out_flat = out2.reshape(-1)
    if pad:
        out_flat = out_flat[:total]
    return out_flat.reshape(orig_shape)


def _reference(x, h_max=1.0):
    return jnp.clip(x.astype(jnp.float32) + 3.0, 0.0, 6.0) * h_max / 6.0


if __name__ == "__main__":
    key = jax.random.PRNGKey(0)
    k1, k2, k3, k4 = jax.random.split(key, 4)

    # 1) Small NCHW input consistent with the module's usage (takes the
    #    small-input bypass by design).
    x1 = jax.random.normal(k1, (2, 4, 16, 16), dtype=jnp.float32) * 4.0
    o1 = jax.block_until_ready(h_sigmoid(x1, h_max=1.0))
    assert o1.shape == x1.shape and o1.dtype == x1.dtype
    assert jnp.allclose(o1, _reference(x1, 1.0), atol=1e-6), "mismatch (small NCHW)"

    # 2) Larger feature map: lane-dense Pallas path with a multi-step grid
    #    (rows=400, cols=4096 -> tm=80, 5 pipelined steps).
    x2 = jax.random.normal(k2, (4, 64, 80, 80), dtype=jnp.float32) * 4.0
    o2 = jax.block_until_ready(h_sigmoid(x2, h_max=1.0))
    assert jnp.allclose(o2, _reference(x2, 1.0), atol=1e-6), "mismatch (large NCHW)"

    # 3) Element count not a multiple of 128: exercises the pad-to-lane-dense
    #    path (forced through Pallas with min_pallas_bytes=0).
    x3 = jax.random.normal(k3, (2, 3, 161, 160), dtype=jnp.float32) * 4.0
    o3 = jax.block_until_ready(h_sigmoid(x3, h_max=1.0, min_pallas_bytes=0))
    assert jnp.allclose(o3, _reference(x3, 1.0), atol=1e-6), "mismatch (padded path)"

    # 4) bf16 input with h_max != 1 (kernel computes in bf16 on purpose,
    #    so compare against an f32 reference with a loose tolerance).
    x4 = (jax.random.normal(k4, (2, 32, 80, 80), dtype=jnp.float32) * 4.0
          ).astype(jnp.bfloat16)
    o4 = jax.block_until_ready(h_sigmoid(x4, h_max=2.0))
    assert o4.dtype == jnp.bfloat16 and o4.shape == x4.shape
    assert jnp.allclose(o4.astype(jnp.float32), _reference(x4, 2.0),
                        atol=5e-2, rtol=5e-2), "mismatch (bf16)"

    print("KERNEL_OK")
</pallas_src>

<mosaic_0001>
module attributes {stable_mosaic.version = 11 : i64} {
  func.func @_h_sigmoid_kernel(%arg0: i32, %arg1: memref<80x4096xf32, #tpu.memory_space<vmem>>, %arg2: memref<80x4096xf32, #tpu.memory_space<vmem>>) attributes {dimension_semantics = [#tpu.dimension_semantics<parallel>], iteration_bounds = array<i64: 5>, scalar_prefetch = 0 : i64, scratch_operands = 0 : i64, tpu.core_type = #tpu.core_type<tc>, window_params = [{transform_indices = @transform_0, window_bounds = array<i64: 80, 4096>}, {transform_indices = @transform_1, window_bounds = array<i64: 80, 4096>}]} {
    %c0 = arith.constant 0 : index
    %c0_0 = arith.constant 0 : index
    %0 = vector.load %arg1[%c0, %c0_0] : memref<80x4096xf32, #tpu.memory_space<vmem>>, vector<80x4096xf32>
    %cst = arith.constant 3.000000e+00 : f32
    %1 = vector.broadcast %cst : f32 to vector<80x4096xf32>
    %2 = arith.addf %0, %1 : vector<80x4096xf32>
    %cst_1 = arith.constant 0.000000e+00 : f32
    %cst_2 = arith.constant 6.000000e+00 : f32
    %3 = vector.broadcast %cst_1 : f32 to vector<80x4096xf32>
    %4 = arith.maximumf %3, %2 : vector<80x4096xf32>
    %5 = vector.broadcast %cst_2 : f32 to vector<80x4096xf32>
    %6 = arith.minimumf %5, %4 : vector<80x4096xf32>
    %cst_3 = arith.constant 0.166666672 : f32
    %7 = vector.broadcast %cst_3 : f32 to vector<80x4096xf32>
    %8 = arith.mulf %6, %7 : vector<80x4096xf32>
    %c0_4 = arith.constant 0 : index
    %c0_5 = arith.constant 0 : index
    %9 = vector.load %arg2[%c0_4, %c0_5] : memref<80x4096xf32, #tpu.memory_space<vmem>>, vector<80x4096xf32>
    tpu.vector_store %arg2[%c0_4, %c0_5], %8 {strides = array<i32>} : memref<80x4096xf32, #tpu.memory_space<vmem>>, vector<80x4096xf32>,
    return
  }
  func.func @transform_0(%arg0: i32) -> (i32, i32) {
    %c0_i32 = arith.constant 0 : i32
    %c0_i32_0 = arith.constant 0 : i32
    return %arg0, %c0_i32 : i32, i32
  }
  func.func @transform_1(%arg0: i32) -> (i32, i32) {
    %c0_i32 = arith.constant 0 : i32
    %c0_i32_0 = arith.constant 0 : i32
    return %arg0, %c0_i32 : i32, i32
  }
}

</mosaic_0001>

<bundles_post_ra>
// kernel: tpu_custom_call.1
= control target key start
LH: loop header
LB: loop body
LE: loop exit
PB: predicated region body
PF: predicated region fallthrough
CT: control target
= control target key end

     0   :  { %6 = vsyncpa [#allocation3], 0  ;;  %s3096_s0 = inlined_call_operand.hbm [shape: f32[400,4096], index: 0, kind: input, shape index: {}]   ;;  %s3097_s1 = inlined_call_operand.hbm [shape: f32[400,4096], index: 1, kind: output, shape index: {}]  }
   0x1   :  { %8 = vsyncpa [#allocation3 + $0x1], 0 }
   0x2   :  { %9 = vsyncpa [#allocation4], 0 }
   0x3   :  { %11 = vsyncpa [#allocation4 + $0x1], 0  ;;  %s2330_s6 = smov 0   ;;  %s2332_s7 = smov 0  }
   0x4   :  { %s2334_s8 = smov 0   ;;  %s2336_s9 = smov 0  }
   0x5 LB: > { %s2351_s10 = sadd.s32 4294967295, %s2314_s9   ;;  %s2150_s11 = sadd.s32 4294967294, %s2314_s9   ;;  %s2314_s9 = sphi %s2336_s9, %s3105_s9   ;;  %s2310_s8 = sphi %s2334_s8, %s3104_s8   ;;  %s2306_s7 = sphi %s2332_s7, %s3103_s7   ;;  %s2302_s6 = sphi %s2330_s6, %s3102_s6  }
   0x6   : > { %s2355_s12 = sadd.s32 1, %s2314_s9   ;;  %s24_s13 = sadd.s32 1, %s2310_s8 }
   0x7   : > { %s21_s14 = ssub.s32 %s2314_s9, %s2355_s12  ;;  %p31_p0 = scmp.ne.s32.totalorder %s2310_s8, %s2306_s7 }
   0x8   : > { %p22_p1 = scmp.eq.s32.totalorder %s21_s14, 0  ;;  %p32_p2 = scmp.eq.s32.totalorder %s2314_s9, 0 }
   0x9   : > { %p37_p3 = scmp.ne.s32.totalorder %s2306_s7, %s2302_s6  ;;  %p38_p4 = scmp.eq.s32.totalorder %s2351_s10, 0 }
   0xa   : > { %s2367_s15 = scalar_select %p22_p1, %s2310_s8, %s24_s13  }
   0xb   : > { %p33_p5 = por %p32_p2, %p31_p0  ;;  %p2369_p6 = por %p38_p4, %p37_p3 }
   0xc   : > { %p61_p7 = scmp.eq.s32.totalorder %s2351_s10, 4  ;;  %p67_p8 = scmp.eq.s32.totalorder %s2150_s11, 4 }
   0xd   : > { %p2180_p9 = scmp.lt.s32.totalorder %s2314_s9, 5  ;;  %s87_s19 = sand.u32 1, %s2310_s8  }
   0xe   : > { %p2375_p10 = por %p61_p7, %p31_p0  ;;  %p2379_p11 = por %p67_p8, %p37_p3 }
   0xf   : > { %s2164_s20 = smul.u32 2560, %s2314_s9  ;;  %p2388_p12 = pnand %p2180_p9, %p33_p5 }
  0x10   : > { %s2166_s21 = smul.u32 2560, %s87_s19  ;;  %s88_s29 = scalar_lea.sflag [#allocation3], %s87_s19 }
  0x11   : > { %s97_s24 = scalar_lea.hbm %s3096_s0, %s2164_s20  ;;  %p2222_p0 = pneg %p2388_p12 }
  0x12   : > { %s98_s26 = sshll.u32 %s97_s24, 4  ;;  %s91_s27 = scalar_lea.vmem [#allocation2], %s2166_s21  ;;  %s99_s26 = int_to_ptr.hbm [resolvable:$true] %s98_s26 }
  0x13   : > { %s100_s28 = sshll.u32 %s91_s27, 4  ;;  %s2218_s30 = sshra.s32 %s99_s26, 4  ;;  %s101_s28 = int_to_ptr.vmem [resolvable:$true] %s100_s28  ;;  %s2219_s30 = int_to_ptr.hbm [resolvable:$true] %s2218_s30 }
  0x14   : > { %s2220_s2 = scalar_lea.hbm %s2219_s30, 2560  ;;  %s2225_s5 = scalar_lea.hbm %s3096_s0, 12800 }
  0x15   : > { %p2221_p13 = scmp.ne.s32.totalorder %s2219_s30, %s2220_s2  ;;  %p2226_p3 = scmp.lt.s32.totalorder %s2219_s30, %s3096_s0 }
  0x16   : > { %p2227_p4 = scmp.lt.s32.totalorder %s2225_s5, %s2220_s2 }
  0x17   : > { %p2223_p1 = pnand %p2222_p0, %p2221_p13 }
  0x18   : > { %p2228_p5 = por %p2227_p4, %p2226_p3 }
  0x19   : > { %p2224_p2 = pneg %p2223_p1 }
  0x1b   : > { %p2229_p7 = pnand %p2228_p5, %p2224_p2 }
  0x1d   : > { %2232 = shalt.err (!%p2229_p7)
}
  0x1e   : > { %s2316_s14 = smov 4096   ;;  %s2317_s19 = smov 256  }
  0x1f   : > { %2175 = dma.hbm_to_vmem [thread:$0]  (!%p2388_p12), %s99_s26, 40960, %s101_s28, %s88_s29, %s2316_s14, %s2316_s14, %s2317_s19  }
  0x20   : > { %p2155_p8 = scmp.ge.s32.totalorder %s2314_s9, 1  ;;  %p108_p9 = scmp.lt.s32.totalorder %s2314_s9, 6 }
  0x22   : > { %p109_p13 = pnand %p2155_p8, %p108_p9 }
  0x23   : > { %s2405_s20 = sand.u32 (!%p109_p13), 1, %s2306_s7  }
  0x24   : > { %112 = sbr.rel (%p109_p13) target bundleno = 425 (0x1a9), region = 24  ;;  %s115_s22 = scalar_lea.sflag (!%p109_p13), [#allocation3], %s2405_s20 }
  0x25   : > { %s2167_s21 = smul.u32 (!%p109_p13), 2560, %s2405_s20 }
  0x27   : > { %s2411_s23 = scalar_lea.vmem (!%p109_p13), [#allocation2], %s2167_s21 }
  0x29   : > { %2293 = dma.done.wait (%p2369_p6), %s115_s22, 40960  }
  0x2a   : > { %2295 = vsyncadd (%p2369_p6), %s115_s22, 4294926336  ;;  %v140_v0 = vld [vmem:[%s2411_s23] sm:$0xff]  ;;  %v141_v1 = vld [vmem:[%s2411_s23 + $0x8] sm:$0xff]  ;;  %s2433_s16 = scalar_lea.vmem [#allocation5], %s2167_s21  ;;  %s2165_s24 = smul.u32 2560, %s2351_s10 }
  0x2b   : > { %v142_v2 = vld [vmem:[%s2411_s23 + $0x10] sm:$0xff]  ;;  %v460_v3 = vadd.f32 3.0, %v140_v0  ;;  %v461_v4 = vadd.f32 3.0, %v141_v1  ;;  %v143_v6 = vld [vmem:[%s2411_s23 + $0x18] sm:$0xff]  ;;  %v144_v7 = vld [vmem:[%s2411_s23 + $0x20] sm:$0xff]  ;;  %s2074_s28 = sshll.u32 %s2433_s16, 4  ;;  %s2075_s28 = int_to_ptr.vmem [resolvable:$true] %s2074_s28 }
  0x2c   : > { %v462_v5 = vadd.f32 3.0, %v142_v2  ;;  %v145_v8 = vld [vmem:[%s2411_s23 + $0x28] sm:$0xff]  ;;  %v463_v9 = vadd.f32 3.0, %v143_v6  ;;  %v464_v10 = vadd.f32 3.0, %v144_v7  ;;  %v146_v12 = vld [vmem:[%s2411_s23 + $0x30] sm:$0xff]  ;;  %v147_v13 = vld [vmem:[%s2411_s23 + $0x38] sm:$0xff]  ;;  %s2073_s27 = scalar_lea.hbm %s3097_s1, %s2165_s24 }
  0x2d   : > { %v465_v11 = vadd.f32 3.0, %v145_v8  ;;  %v780_v14 = vmax.f32 %v460_v3, 0.0  ;;  %v781_v15 = vmax.f32 %v461_v4, 0.0  ;;  %v466_v17 = vadd.f32 3.0, %v146_v12  ;;  %v148_v22 = vld [vmem:[%s2411_s23 + $0x40] sm:$0xff]  ;;  %v149_v23 = vld [vmem:[%s2411_s23 + $0x48] sm:$0xff] }
  0x2e   : > { %v782_v16 = vmax.f32 %v462_v5, 0.0  ;;  %v783_v18 = vmax.f32 %v463_v9, 0.0  ;;  %v784_v19 = vmax.f32 %v464_v10, 0.0  ;;  %v467_v21 = vadd.f32 3.0, %v147_v13  ;;  %v150_v28 = vld [vmem:[%s2411_s23 + $0x50] sm:$0xff]  ;;  %v151_v29 = vld [vmem:[%s2411_s23 + $0x58] sm:$0xff] }
  0x2f   : > { %v785_v20 = vmax.f32 %v465_v11, 0.0  ;;  %v1100_v24 = vmin.f32 %v780_v14, 6.0  ;;  %v1101_v25 = vmin.f32 %v781_v15, 6.0  ;;  %v786_v27 = vmax.f32 %v466_v17, 0.0  ;;  %v152_v34 = vld [vmem:[%s2411_s23 + $0x60] sm:$0xff]  ;;  %v153_v35 = vld [vmem:[%s2411_s23 + $0x68] sm:$0xff] }
  0x30   : > { %v1102_v26 = vmin.f32 %v782_v16, 6.0  ;;  %v1103_v30 = vmin.f32 %v783_v18, 6.0  ;;  %v1104_v31 = vmin.f32 %v784_v19, 6.0  ;;  %v787_v33 = vmax.f32 %v467_v21, 0.0  ;;  %v154_v46 = vld [vmem:[%s2411_s23 + $0x70] sm:$0xff]  ;;  %v155_v51 = vld [vmem:[%s2411_s23 + $0x78] sm:$0xff] }
  0x31   : > { %v1105_v32 = vmin.f32 %v785_v20, 6.0  ;;  %v1420_v36 = vmul.f32 0.16666667, %v1100_v24  ;;  %v1421_v37 = vmul.f32 0.16666667, %v1101_v25  ;;  %v1106_v42 = vmin.f32 %v786_v27, 6.0 }
  0x32   : > { %v1422_v38 = vmul.f32 0.16666667, %v1102_v26  ;;  %v1423_v39 = vmul.f32 0.16666667, %v1103_v30  ;;  %v1424_v40 = vmul.f32 0.16666667, %v1104_v31 }
  0x33   : > { %v1425_v41 = vmul.f32 0.16666667, %v1105_v32  ;;  %1740 = vst [vmem:[%s2433_s16] sm:$0xff] %v1420_v36  ;;  %v1107_v43 = vmin.f32 %v787_v33, 6.0  ;;  %v468_v44 = vadd.f32 3.0, %v148_v22  ;;  %v469_v45 = vadd.f32 3.0, %v149_v23  ;;  %v156_v59 = vld [vmem:[%s2411_s23 + $0x80] sm:$0xff] }
  0x34   : > { %1741 = vst [vmem:[%s2433_s16 + $0x8] sm:$0xff] %v1421_v37  ;;  %v470_v47 = vadd.f32 3.0, %v150_v28  ;;  %v471_v48 = vadd.f32 3.0, %v151_v29  ;;  %v472_v49 = vadd.f32 3.0, %v152_v34  ;;  %v473_v50 = vadd.f32 3.0, %v153_v35  ;;  %v157_v0 = vld [vmem:[%s2411_s23 + $0x88] sm:$0xff] }
  0x35   : > { %1742 = vst [vmem:[%s2433_s16 + $0x10] sm:$0xff] %v1422_v38  ;;  %v1426_v52 = vmul.f32 0.16666667, %v1106_v42  ;;  %v1427_v53 = vmul.f32 0.16666667, %v1107_v43  ;;  %v788_v54 = vmax.f32 %v468_v44, 0.0 }
  0x36   : > { %1743 = vst [vmem:[%s2433_s16 + $0x18] sm:$0xff] %v1423_v39  ;;  %v789_v55 = vmax.f32 %v469_v45, 0.0  ;;  %v790_v56 = vmax.f32 %v470_v47, 0.0  ;;  %v791_v57 = vmax.f32 %v471_v48, 0.0  ;;  %v792_v58 = vmax.f32 %v472_v49, 0.0  ;;  %v158_v5 = vld [vmem:[%s2411_s23 + $0x90] sm:$0xff] }
  0x37   : > { %1744 = vst [vmem:[%s2433_s16 + $0x20] sm:$0xff] %v1424_v40  ;;  %v1108_v60 = vmin.f32 %v788_v54, 6.0  ;;  %v793_v61 = vmax.f32 %v473_v50, 0.0  ;;  %v474_v62 = vadd.f32 3.0, %v154_v46  ;;  %v475_v63 = vadd.f32 3.0, %v155_v51  ;;  %v159_v6 = vld [vmem:[%s2411_s23 + $0x98] sm:$0xff] }
  0x38   : > { %1745 = vst [vmem:[%s2433_s16 + $0x28] sm:$0xff] %v1425_v41  ;;  %v1109_v1 = vmin.f32 %v789_v55, 6.0  ;;  %v1110_v2 = vmin.f32 %v790_v56, 6.0  ;;  %v1111_v3 = vmin.f32 %v791_v57, 6.0  ;;  %v1112_v4 = vmin.f32 %v792_v58, 6.0  ;;  %v160_v7 = vld [vmem:[%s2411_s23 + $0xa0] sm:$0xff] }
  0x39   : > { %1746 = vst [vmem:[%s2433_s16 + $0x30] sm:$0xff] %v1426_v52  ;;  %v1428_v8 = vmul.f32 0.16666667, %v1108_v60  ;;  %v1113_v9 = vmin.f32 %v793_v61, 6.0  ;;  %v794_v10 = vmax.f32 %v474_v62, 0.0  ;;  %v795_v11 = vmax.f32 %v475_v63, 0.0 }
  0x3a   : > { %v161_v12 = vld [vmem:[%s2411_s23 + $0xa8] sm:$0xff]  ;;  %1747 = vst [vmem:[%s2433_s16 + $0x38] sm:$0xff] %v1427_v53  ;;  %v1429_v13 = vmul.f32 0.16666667, %v1109_v1  ;;  %v1430_v14 = vmul.f32 0.16666667, %v1110_v2 }
  0x3b   : > { %v476_v15 = vadd.f32 3.0, %v156_v59  ;;  %v162_v16 = vld [vmem:[%s2411_s23 + $0xb0] sm:$0xff]  ;;  %1748 = vst [vmem:[%s2433_s16 + $0x40] sm:$0xff] %v1428_v8  ;;  %v1431_v17 = vmul.f32 0.16666667, %v1111_v3  ;;  %v1114_v19 = vmin.f32 %v794_v10, 6.0 }
  0x3c   : > { %v1432_v18 = vmul.f32 0.16666667, %v1112_v4  ;;  %1749 = vst [vmem:[%s2433_s16 + $0x48] sm:$0xff] %v1429_v13  ;;  %v1433_v20 = vmul.f32 0.16666667, %v1113_v9  ;;  %v1115_v21 = vmin.f32 %v795_v11, 6.0 }
  0x3d   : > { %v796_v22 = vmax.f32 %v476_v15, 0.0  ;;  %v477_v23 = vadd.f32 3.0, %v157_v0  ;;  %1750 = vst [vmem:[%s2433_s16 + $0x50] sm:$0xff] %v1430_v14  ;;  %v1434_v24 = vmul.f32 0.16666667, %v1114_v19  ;;  %v478_v25 = vadd.f32 3.0, %v158_v5 }
  0x3e   : > { %v479_v26 = vadd.f32 3.0, %v159_v6  ;;  %v480_v27 = vadd.f32 3.0, %v160_v7  ;;  %1751 = vst [vmem:[%s2433_s16 + $0x58] sm:$0xff] %v1431_v17  ;;  %v1435_v28 = vmul.f32 0.16666667, %v1115_v21  ;;  %v481_v31 = vadd.f32 3.0, %v161_v12 }
  0x3f   : > { %v1116_v29 = vmin.f32 %v796_v22, 6.0  ;;  %v797_v30 = vmax.f32 %v477_v23, 0.0  ;;  %1752 = vst [vmem:[%s2433_s16 + $0x60] sm:$0xff] %v1432_v18  ;;  %v798_v32 = vmax.f32 %v478_v25, 0.0  ;;  %v482_v35 = vadd.f32 3.0, %v162_v16  ;;  %v163_v36 = vld [vmem:[%s2411_s23 + $0xb8] sm:$0xff] }
  0x40   : > { %v799_v33 = vmax.f32 %v479_v26, 0.0  ;;  %v800_v34 = vmax.f32 %v480_v27, 0.0  ;;  %1753 = vst [vmem:[%s2433_s16 + $0x68] sm:$0xff] %v1433_v20  ;;  %v801_v39 = vmax.f32 %v481_v31, 0.0  ;;  %v483_v40 = vadd.f32 3.0, %v163_v36  ;;  %v164_v45 = vld [vmem:[%s2411_s23 + $0xc0] sm:$0xff] }
  0x41   : > { %v1436_v37 = vmul.f32 0.16666667, %v1116_v29  ;;  %v1117_v38 = vmin.f32 %v797_v30, 6.0  ;;  %1754 = vst [vmem:[%s2433_s16 + $0x70] sm:$0xff] %v1434_v24  ;;  %v1118_v41 = vmin.f32 %v798_v32, 6.0  ;;  %v802_v44 = vmax.f32 %v482_v35, 0.0 }
  0x42   : > { %v1119_v42 = vmin.f32 %v799_v33, 6.0  ;;  %v1120_v43 = vmin.f32 %v800_v34, 6.0  ;;  %1755 = vst [vmem:[%s2433_s16 + $0x78] sm:$0xff] %v1435_v28  ;;  %v1121_v47 = vmin.f32 %v801_v39, 6.0  ;;  %v803_v48 = vmax.f32 %v483_v40, 0.0  ;;  %v165_v58 = vld [vmem:[%s2411_s23 + $0xc8] sm:$0xff] }
  0x43   : > { %v1437_v46 = vmul.f32 0.16666667, %v1117_v38  ;;  %v484_v49 = vadd.f32 3.0, %v164_v45  ;;  %1756 = vst [vmem:[%s2433_s16 + $0x80] sm:$0xff] %v1436_v37  ;;  %v1438_v50 = vmul.f32 0.16666667, %v1118_v41 }
  0x44   : > { %v1439_v51 = vmul.f32 0.16666667, %v1119_v42  ;;  %v1122_v52 = vmin.f32 %v802_v44, 6.0  ;;  %v1440_v53 = vmul.f32 0.16666667, %v1120_v43  ;;  %v1123_v55 = vmin.f32 %v803_v48, 6.0 }
  0x45   : > { %1757 = vst [vmem:[%s2433_s16 + $0x88] sm:$0xff] %v1437_v46  ;;  %v1441_v54 = vmul.f32 0.16666667, %v1121_v47  ;;  %v804_v57 = vmax.f32 %v484_v49, 0.0  ;;  %v166_v59 = vld [vmem:[%s2411_s23 + $0xd0] sm:$0xff]  ;;  %v485_v61 = vadd.f32 3.0, %v165_v58 }
  0x46   : > { %1758 = vst [vmem:[%s2433_s16 + $0x90] sm:$0xff] %v1438_v50  ;;  %v1442_v56 = vmul.f32 0.16666667, %v1122_v52  ;;  %v1443_v60 = vmul.f32 0.16666667, %v1123_v55  ;;  %v486_v62 = vadd.f32 3.0, %v166_v59 }
  0x47   : > { %1759 = vst [vmem:[%s2433_s16 + $0x98] sm:$0xff] %v1439_v51  ;;  %v167_v63 = vld [vmem:[%s2411_s23 + $0xd8] sm:$0xff]  ;;  %v1124_v0 = vmin.f32 %v804_v57, 6.0  ;;  %v168_v2 = vld [vmem:[%s2411_s23 + $0xe0] sm:$0xff]  ;;  %v169_v3 = vld [vmem:[%s2411_s23 + $0xe8] sm:$0xff]  ;;  %v805_v5 = vmax.f32 %v485_v61, 0.0 }
  0x48   : > { %1760 = vst [vmem:[%s2433_s16 + $0xa0] sm:$0xff] %v1440_v53  ;;  %v487_v1 = vadd.f32 3.0, %v167_v63  ;;  %v170_v4 = vld [vmem:[%s2411_s23 + $0xf0] sm:$0xff]  ;;  %v806_v6 = vmax.f32 %v486_v62, 0.0  ;;  %v488_v7 = vadd.f32 3.0, %v168_v2  ;;  %v489_v8 = vadd.f32 3.0, %v169_v3 }
  0x49   : > { %1761 = vst [vmem:[%s2433_s16 + $0xa8] sm:$0xff] %v1441_v54  ;;  %v171_v9 = vld [vmem:[%s2411_s23 + $0xf8] sm:$0xff]  ;;  %v1444_v10 = vmul.f32 0.16666667, %v1124_v0  ;;  %v490_v12 = vadd.f32 3.0, %v170_v4  ;;  %v1125_v14 = vmin.f32 %v805_v5, 6.0 }
  0x4a   : > { %1762 = vst [vmem:[%s2433_s16 + $0xb0] sm:$0xff] %v1442_v56  ;;  %v807_v11 = vmax.f32 %v487_v1, 0.0  ;;  %v491_v13 = vadd.f32 3.0, %v171_v9  ;;  %v1126_v15 = vmin.f32 %v806_v6, 6.0  ;;  %v808_v16 = vmax.f32 %v488_v7, 0.0  ;;  %v172_v18 = vld [vmem:[%s2411_s23 + $0x100] sm:$0xff] }
  0x4b   : > { %1763 = vst [vmem:[%s2433_s16 + $0xb8] sm:$0xff] %v1443_v60  ;;  %v809_v17 = vmax.f32 %v489_v8, 0.0  ;;  %v810_v20 = vmax.f32 %v490_v12, 0.0  ;;  %v492_v22 = vadd.f32 3.0, %v172_v18  ;;  %v173_v23 = vld [vmem:[%s2411_s23 + $0x108] sm:$0xff]  ;;  %v174_v32 = vld [vmem:[%s2411_s23 + $0x110] sm:$0xff] }
  0x4c   : > { %1764 = vst [vmem:[%s2433_s16 + $0xc0] sm:$0xff] %v1444_v10  ;;  %v1127_v19 = vmin.f32 %v807_v11, 6.0  ;;  %v811_v21 = vmax.f32 %v491_v13, 0.0  ;;  %v1445_v24 = vmul.f32 0.16666667, %v1125_v14  ;;  %v1128_v26 = vmin.f32 %v808_v16, 6.0 }
  0x4d   : > { %v1446_v25 = vmul.f32 0.16666667, %v1126_v15  ;;  %v1129_v27 = vmin.f32 %v809_v17, 6.0  ;;  %v1130_v29 = vmin.f32 %v810_v20, 6.0  ;;  %v812_v31 = vmax.f32 %v492_v22, 0.0  ;;  %v175_v41 = vld [vmem:[%s2411_s23 + $0x118] sm:$0xff] }
  0x4e   : > { %v1447_v28 = vmul.f32 0.16666667, %v1127_v19  ;;  %v1131_v30 = vmin.f32 %v811_v21, 6.0  ;;  %1765 = vst [vmem:[%s2433_s16 + $0xc8] sm:$0xff] %v1445_v24  ;;  %v1448_v33 = vmul.f32 0.16666667, %v1128_v26 }
  0x4f   : > { %v1449_v34 = vmul.f32 0.16666667, %v1129_v27  ;;  %v493_v35 = vadd.f32 3.0, %v173_v23  ;;  %1766 = vst [vmem:[%s2433_s16 + $0xd0] sm:$0xff] %v1446_v25  ;;  %v1450_v36 = vmul.f32 0.16666667, %v1130_v29 }
  0x50   : > { %v1451_v37 = vmul.f32 0.16666667, %v1131_v30  ;;  %v1132_v38 = vmin.f32 %v812_v31, 6.0  ;;  %1767 = vst [vmem:[%s2433_s16 + $0xd8] sm:$0xff] %v1447_v28  ;;  %v494_v40 = vadd.f32 3.0, %v174_v32  ;;  %v176_v42 = vld [vmem:[%s2411_s23 + $0x120] sm:$0xff] }
  0x51   : > { %v813_v39 = vmax.f32 %v493_v35, 0.0  ;;  %v177_v43 = vld [vmem:[%s2411_s23 + $0x128] sm:$0xff]  ;;  %1768 = vst [vmem:[%s2433_s16 + $0xe0] sm:$0xff] %v1448_v33  ;;  %v495_v45 = vadd.f32 3.0, %v175_v41  ;;  %v496_v46 = vadd.f32 3.0, %v176_v42  ;;  %v178_v50 = vld [vmem:[%s2411_s23 + $0x130] sm:$0xff] }
  0x52   : > { %v1452_v44 = vmul.f32 0.16666667, %v1132_v38  ;;  %v497_v47 = vadd.f32 3.0, %v177_v43  ;;  %1769 = vst [vmem:[%s2433_s16 + $0xe8] sm:$0xff] %v1449_v34  ;;  %v814_v49 = vmax.f32 %v494_v40, 0.0  ;;  %v179_v51 = vld [vmem:[%s2411_s23 + $0x138] sm:$0xff] }
  0x53   : > { %v1133_v48 = vmin.f32 %v813_v39, 6.0  ;;  %v180_v52 = vld [vmem:[%s2411_s23 + $0x140] sm:$0xff]  ;;  %1770 = vst [vmem:[%s2433_s16 + $0xf0] sm:$0xff] %v1450_v36  ;;  %v815_v53 = vmax.f32 %v495_v45, 0.0  ;;  %v816_v54 = vmax.f32 %v496_v46, 0.0  ;;  %v498_v56 = vadd.f32 3.0, %v178_v50 }
  0x54   : > { %v817_v55 = vmax.f32 %v497_v47, 0.0  ;;  %v181_v57 = vld [vmem:[%s2411_s23 + $0x148] sm:$0xff]  ;;  %1771 = vst [vmem:[%s2433_s16 + $0xf8] sm:$0xff] %v1451_v37  ;;  %v1134_v59 = vmin.f32 %v814_v49, 6.0  ;;  %v499_v60 = vadd.f32 3.0, %v179_v51  ;;  %v500_v61 = vadd.f32 3.0, %v180_v52 }
  0x55   : > { %v1453_v58 = vmul.f32 0.16666667, %v1133_v48  ;;  %1772 = vst [vmem:[%s2433_s16 + $0x100] sm:$0xff] %v1452_v44  ;;  %v1135_v62 = vmin.f32 %v815_v53, 6.0  ;;  %v1136_v63 = vmin.f32 %v816_v54, 6.0  ;;  %v818_v1 = vmax.f32 %v498_v56, 0.0 }
  0x56   : > { %v1137_v0 = vmin.f32 %v817_v55, 6.0  ;;  %v182_v2 = vld [vmem:[%s2411_s23 + $0x150] sm:$0xff]  ;;  %v1454_v3 = vmul.f32 0.16666667, %v1134_v59  ;;  %v819_v4 = vmax.f32 %v499_v60, 0.0  ;;  %v820_v5 = vmax.f32 %v500_v61, 0.0 }
  0x57   : > { %1773 = vst [vmem:[%s2433_s16 + $0x108] sm:$0xff] %v1453_v58  ;;  %v501_v6 = vadd.f32 3.0, %v181_v57  ;;  %v1455_v7 = vmul.f32 0.16666667, %v1135_v62  ;;  %v1456_v8 = vmul.f32 0.16666667, %v1136_v63 }
  0x58   : > { %v1457_v9 = vmul.f32 0.16666667, %v1137_v0  ;;  %1774 = vst [vmem:[%s2433_s16 + $0x110] sm:$0xff] %v1454_v3  ;;  %v1138_v10 = vmin.f32 %v818_v1, 6.0  ;;  %v1139_v11 = vmin.f32 %v819_v4, 6.0  ;;  %v1140_v12 = vmin.f32 %v820_v5, 6.0 }
  0x59   : > { %v821_v13 = vmax.f32 %v501_v6, 0.0  ;;  %v183_v14 = vld [vmem:[%s2411_s23 + $0x158] sm:$0xff]  ;;  %1775 = vst [vmem:[%s2433_s16 + $0x118] sm:$0xff] %v1455_v7  ;;  %v502_v15 = vadd.f32 3.0, %v182_v2  ;;  %v184_v17 = vld [vmem:[%s2411_s23 + $0x160] sm:$0xff]  ;;  %v185_v18 = vld [vmem:[%s2411_s23 + $0x168] sm:$0xff] }
  0x5a   : > { %v503_v16 = vadd.f32 3.0, %v183_v14  ;;  %v186_v19 = vld [vmem:[%s2411_s23 + $0x170] sm:$0xff]  ;;  %1776 = vst [vmem:[%s2433_s16 + $0x120] sm:$0xff] %v1456_v8  ;;  %v1458_v20 = vmul.f32 0.16666667, %v1138_v10  ;;  %v504_v26 = vadd.f32 3.0, %v184_v17 }
  0x5b   : > { %v1459_v21 = vmul.f32 0.16666667, %v1139_v11  ;;  %v1141_v22 = vmin.f32 %v821_v13, 6.0  ;;  %1777 = vst [vmem:[%s2433_s16 + $0x128] sm:$0xff] %v1457_v9  ;;  %v1460_v23 = vmul.f32 0.16666667, %v1140_v12 }
  0x5c   : > { %v822_v24 = vmax.f32 %v502_v15, 0.0  ;;  %v823_v25 = vmax.f32 %v503_v16, 0.0  ;;  %1778 = vst [vmem:[%s2433_s16 + $0x130] sm:$0xff] %v1458_v20  ;;  %v505_v28 = vadd.f32 3.0, %v185_v18  ;;  %v506_v29 = vadd.f32 3.0, %v186_v19  ;;  %v187_v30 = vld [vmem:[%s2411_s23 + $0x178] sm:$0xff] }
  0x5d   : > { %v1461_v27 = vmul.f32 0.16666667, %v1141_v22  ;;  %1779 = vst [vmem:[%s2433_s16 + $0x138] sm:$0xff] %v1459_v21  ;;  %v824_v33 = vmax.f32 %v504_v26, 0.0  ;;  %v507_v34 = vadd.f32 3.0, %v187_v30  ;;  %v188_v35 = vld [vmem:[%s2411_s23 + $0x180] sm:$0xff] }
  0x5e   : > { %v1142_v31 = vmin.f32 %v822_v24, 6.0  ;;  %v1143_v32 = vmin.f32 %v823_v25, 6.0  ;;  %1780 = vst [vmem:[%s2433_s16 + $0x140] sm:$0xff] %v1460_v23  ;;  %v825_v36 = vmax.f32 %v505_v28, 0.0  ;;  %v826_v37 = vmax.f32 %v506_v29, 0.0  ;;  %v189_v39 = vld [vmem:[%s2411_s23 + $0x188] sm:$0xff] }
  0x5f   : > { %v508_v38 = vadd.f32 3.0, %v188_v35  ;;  %v190_v40 = vld [vmem:[%s2411_s23 + $0x190] sm:$0xff]  ;;  %1781 = vst [vmem:[%s2433_s16 + $0x148] sm:$0xff] %v1461_v27  ;;  %v1144_v43 = vmin.f32 %v824_v33, 6.0  ;;  %v827_v46 = vmax.f32 %v507_v34, 0.0  ;;  %v191_v48 = vld [vmem:[%s2411_s23 + $0x198] sm:$0xff] }
  0x60   : > { %v1462_v41 = vmul.f32 0.16666667, %v1142_v31  ;;  %v1463_v42 = vmul.f32 0.16666667, %v1143_v32  ;;  %v1145_v44 = vmin.f32 %v825_v36, 6.0  ;;  %v1146_v45 = vmin.f32 %v826_v37, 6.0 }
  0x61   : > { %v828_v47 = vmax.f32 %v508_v38, 0.0  ;;  %v192_v49 = vld [vmem:[%s2411_s23 + $0x1a0] sm:$0xff]  ;;  %v1464_v50 = vmul.f32 0.16666667, %v1144_v43  ;;  %v509_v51 = vadd.f32 3.0, %v189_v39  ;;  %v510_v52 = vadd.f32 3.0, %v190_v40 }
  0x62   : > { %1782 = vst [vmem:[%s2433_s16 + $0x150] sm:$0xff] %v1462_v41  ;;  %v511_v53 = vadd.f32 3.0, %v191_v48  ;;  %v1465_v54 = vmul.f32 0.16666667, %v1145_v44  ;;  %v1466_v55 = vmul.f32 0.16666667, %v1146_v45 }
  0x63   : > { %1783 = vst [vmem:[%s2433_s16 + $0x158] sm:$0xff] %v1463_v42  ;;  %v1147_v56 = vmin.f32 %v827_v46, 6.0  ;;  %v1148_v57 = vmin.f32 %v828_v47, 6.0  ;;  %v829_v58 = vmax.f32 %v509_v51, 0.0  ;;  %v830_v59 = vmax.f32 %v510_v52, 0.0  ;;  %v193_v61 = vld [vmem:[%s2411_s23 + $0x1a8] sm:$0xff] }
  0x64   : > { %1784 = vst [vmem:[%s2433_s16 + $0x160] sm:$0xff] %v1464_v50  ;;  %v831_v60 = vmax.f32 %v511_v53, 0.0  ;;  %v512_v63 = vadd.f32 3.0, %v192_v49  ;;  %v513_v0 = vadd.f32 3.0, %v193_v61  ;;  %v194_v1 = vld [vmem:[%s2411_s23 + $0x1b0] sm:$0xff]  ;;  %v195_v9 = vld [vmem:[%s2411_s23 + $0x1b8] sm:$0xff] }
  0x65   : > { %1785 = vst [vmem:[%s2433_s16 + $0x168] sm:$0xff] %v1465_v54  ;;  %v1467_v62 = vmul.f32 0.16666667, %v1147_v56  ;;  %v1468_v2 = vmul.f32 0.16666667, %v1148_v57  ;;  %v1149_v3 = vmin.f32 %v829_v58, 6.0 }
  0x66   : > { %1786 = vst [vmem:[%s2433_s16 + $0x170] sm:$0xff] %v1466_v55  ;;  %v1150_v4 = vmin.f32 %v830_v59, 6.0  ;;  %v1151_v5 = vmin.f32 %v831_v60, 6.0  ;;  %v832_v6 = vmax.f32 %v512_v63, 0.0  ;;  %v833_v7 = vmax.f32 %v513_v0, 0.0  ;;  %v196_v10 = vld [vmem:[%s2411_s23 + $0x1c0] sm:$0xff] }
  0x67   : > { %1787 = vst [vmem:[%s2433_s16 + $0x178] sm:$0xff] %v1467_v62  ;;  %v514_v8 = vadd.f32 3.0, %v194_v1  ;;  %v1469_v11 = vmul.f32 0.16666667, %v1149_v3  ;;  %v515_v13 = vadd.f32 3.0, %v195_v9  ;;  %v197_v18 = vld [vmem:[%s2411_s23 + $0x1c8] sm:$0xff] }
  0x68   : > { %1788 = vst [vmem:[%s2433_s16 + $0x180] sm:$0xff] %v1468_v2  ;;  %v1470_v12 = vmul.f32 0.16666667, %v1150_v4  ;;  %v1471_v14 = vmul.f32 0.16666667, %v1151_v5  ;;  %v1152_v15 = vmin.f32 %v832_v6, 6.0 }
  0x69   : > { %v1153_v16 = vmin.f32 %v833_v7, 6.0  ;;  %v834_v17 = vmax.f32 %v514_v8, 0.0  ;;  %1789 = vst [vmem:[%s2433_s16 + $0x188] sm:$0xff] %v1469_v11  ;;  %v835_v19 = vmax.f32 %v515_v13, 0.0  ;;  %v516_v20 = vadd.f32 3.0, %v196_v10  ;;  %v198_v22 = vld [vmem:[%s2411_s23 + $0x1d0] sm:$0xff] }
  0x6a   : > { %v517_v21 = vadd.f32 3.0, %v197_v18  ;;  %v199_v23 = vld [vmem:[%s2411_s23 + $0x1d8] sm:$0xff]  ;;  %1790 = vst [vmem:[%s2433_s16 + $0x190] sm:$0xff] %v1470_v12  ;;  %v1472_v24 = vmul.f32 0.16666667, %v1152_v15  ;;  %v518_v30 = vadd.f32 3.0, %v198_v22 }
  0x6b   : > { %v1473_v25 = vmul.f32 0.16666667, %v1153_v16  ;;  %v1154_v26 = vmin.f32 %v834_v17, 6.0  ;;  %1791 = vst [vmem:[%s2433_s16 + $0x198] sm:$0xff] %v1471_v14  ;;  %v1155_v27 = vmin.f32 %v835_v19, 6.0  ;;  %v836_v28 = vmax.f32 %v516_v20, 0.0 }
  0x6c   : > { %v837_v29 = vmax.f32 %v517_v21, 0.0  ;;  %v200_v31 = vld [vmem:[%s2411_s23 + $0x1e0] sm:$0xff]  ;;  %1792 = vst [vmem:[%s2433_s16 + $0x1a0] sm:$0xff] %v1472_v24  ;;  %v519_v33 = vadd.f32 3.0, %v199_v23  ;;  %v201_v35 = vld [vmem:[%s2411_s23 + $0x1e8] sm:$0xff]  ;;  %v838_v39 = vmax.f32 %v518_v30, 0.0 }
  0x6d   : > { %v1474_v32 = vmul.f32 0.16666667, %v1154_v26  ;;  %v520_v34 = vadd.f32 3.0, %v200_v31  ;;  %1793 = vst [vmem:[%s2433_s16 + $0x1a8] sm:$0xff] %v1473_v25  ;;  %v1475_v36 = vmul.f32 0.16666667, %v1155_v27 }
  0x6e   : > { %v1156_v37 = vmin.f32 %v836_v28, 6.0  ;;  %v1157_v38 = vmin.f32 %v837_v29, 6.0  ;;  %v839_v40 = vmax.f32 %v519_v33, 0.0  ;;  %v521_v42 = vadd.f32 3.0, %v201_v35  ;;  %v202_v43 = vld [vmem:[%s2411_s23 + $0x1f0] sm:$0xff]  ;;  %v203_v44 = vld [vmem:[%s2411_s23 + $0x1f8] sm:$0xff] }
  0x6f   : > { %1794 = vst [vmem:[%s2433_s16 + $0x1b0] sm:$0xff] %v1474_v32  ;;  %v840_v41 = vmax.f32 %v520_v34, 0.0  ;;  %v1158_v47 = vmin.f32 %v838_v39, 6.0  ;;  %v522_v51 = vadd.f32 3.0, %v202_v43  ;;  %v204_v52 = vld [vmem:[%s2411_s23 + $0x200] sm:$0xff]  ;;  %v205_v53 = vld [vmem:[%s2411_s23 + $0x208] sm:$0xff] }
  0x70   : > { %1795 = vst [vmem:[%s2433_s16 + $0x1b8] sm:$0xff] %v1475_v36  ;;  %v1476_v45 = vmul.f32 0.16666667, %v1156_v37  ;;  %v1477_v46 = vmul.f32 0.16666667, %v1157_v38  ;;  %v1159_v48 = vmin.f32 %v839_v40, 6.0 }
  0x71   : > { %v1160_v49 = vmin.f32 %v840_v41, 6.0  ;;  %v841_v50 = vmax.f32 %v521_v42, 0.0  ;;  %v1478_v54 = vmul.f32 0.16666667, %v1158_v47  ;;  %v523_v55 = vadd.f32 3.0, %v203_v44  ;;  %v206_v1 = vld [vmem:[%s2411_s23 + $0x210] sm:$0xff] }
  0x72   : > { %1796 = vst [vmem:[%s2433_s16 + $0x1c0] sm:$0xff] %v1476_v45  ;;  %v524_v56 = vadd.f32 3.0, %v204_v52  ;;  %v525_v57 = vadd.f32 3.0, %v205_v53  ;;  %v1479_v58 = vmul.f32 0.16666667, %v1159_v48  ;;  %v842_v61 = vmax.f32 %v522_v51, 0.0 }
  0x73   : > { %1797 = vst [vmem:[%s2433_s16 + $0x1c8] sm:$0xff] %v1477_v46  ;;  %v1480_v59 = vmul.f32 0.16666667, %v1160_v49  ;;  %v1161_v60 = vmin.f32 %v841_v50, 6.0  ;;  %v843_v62 = vmax.f32 %v523_v55, 0.0  ;;  %v526_v3 = vadd.f32 3.0, %v206_v1 }
  0x74   : > { %1798 = vst [vmem:[%s2433_s16 + $0x1d0] sm:$0xff] %v1478_v54  ;;  %v844_v63 = vmax.f32 %v524_v56, 0.0  ;;  %v845_v0 = vmax.f32 %v525_v57, 0.0  ;;  %v207_v4 = vld [vmem:[%s2411_s23 + $0x218] sm:$0xff]  ;;  %v208_v5 = vld [vmem:[%s2411_s23 + $0x220] sm:$0xff]  ;;  %v1162_v6 = vmin.f32 %v842_v61, 6.0 }
  0x75   : > { %1799 = vst [vmem:[%s2433_s16 + $0x1d8] sm:$0xff] %v1479_v58  ;;  %v1481_v2 = vmul.f32 0.16666667, %v1161_v60  ;;  %v1163_v7 = vmin.f32 %v843_v62, 6.0  ;;  %v209_v10 = vld [vmem:[%s2411_s23 + $0x228] sm:$0xff]  ;;  %v846_v11 = vmax.f32 %v526_v3, 0.0 }
  0x76   : > { %1800 = vst [vmem:[%s2433_s16 + $0x1e0] sm:$0xff] %v1480_v59  ;;  %v1164_v8 = vmin.f32 %v844_v63, 6.0  ;;  %v1165_v9 = vmin.f32 %v845_v0, 6.0  ;;  %v527_v12 = vadd.f32 3.0, %v207_v4  ;;  %v528_v13 = vadd.f32 3.0, %v208_v5  ;;  %v210_v15 = vld [vmem:[%s2411_s23 + $0x230] sm:$0xff] }
  0x77   : > { %1801 = vst [vmem:[%s2433_s16 + $0x1e8] sm:$0xff] %v1481_v2  ;;  %v529_v14 = vadd.f32 3.0, %v209_v10  ;;  %v1482_v16 = vmul.f32 0.16666667, %v1162_v6  ;;  %v1483_v17 = vmul.f32 0.16666667, %v1163_v7 }
  0x78   : > { %v1484_v18 = vmul.f32 0.16666667, %v1164_v8  ;;  %v1485_v19 = vmul.f32 0.16666667, %v1165_v9  ;;  %v1166_v20 = vmin.f32 %v846_v11, 6.0  ;;  %v847_v21 = vmax.f32 %v527_v12, 0.0 }
  0x79   : > { %v848_v22 = vmax.f32 %v528_v13, 0.0  ;;  %v211_v23 = vld [vmem:[%s2411_s23 + $0x238] sm:$0xff]  ;;  %1802 = vst [vmem:[%s2433_s16 + $0x1f0] sm:$0xff] %v1482_v16  ;;  %v849_v24 = vmax.f32 %v529_v14, 0.0  ;;  %v530_v25 = vadd.f32 3.0, %v210_v15  ;;  %v212_v27 = vld [vmem:[%s2411_s23 + $0x240] sm:$0xff] }
  0x7a   : > { %v531_v26 = vadd.f32 3.0, %v211_v23  ;;  %v213_v28 = vld [vmem:[%s2411_s23 + $0x248] sm:$0xff]  ;;  %1803 = vst [vmem:[%s2433_s16 + $0x1f8] sm:$0xff] %v1483_v17  ;;  %v1486_v29 = vmul.f32 0.16666667, %v1166_v20  ;;  %v1167_v30 = vmin.f32 %v847_v21, 6.0 }
  0x7b   : > { %v1168_v31 = vmin.f32 %v848_v22, 6.0  ;;  %v532_v32 = vadd.f32 3.0, %v212_v27  ;;  %1804 = vst [vmem:[%s2433_s16 + $0x200] sm:$0xff] %v1484_v18  ;;  %v1169_v33 = vmin.f32 %v849_v24, 6.0  ;;  %v850_v34 = vmax.f32 %v530_v25, 0.0  ;;  %v214_v37 = vld [vmem:[%s2411_s23 + $0x250] sm:$0xff] }
  0x7c   : > { %v851_v35 = vmax.f32 %v531_v26, 0.0  ;;  %v533_v36 = vadd.f32 3.0, %v213_v28  ;;  %1805 = vst [vmem:[%s2433_s16 + $0x208] sm:$0xff] %v1485_v19  ;;  %v1487_v38 = vmul.f32 0.16666667, %v1167_v30  ;;  %v534_v46 = vadd.f32 3.0, %v214_v37 }
  0x7d   : > { %v1488_v39 = vmul.f32 0.16666667, %v1168_v31  ;;  %v852_v40 = vmax.f32 %v532_v32, 0.0  ;;  %1806 = vst [vmem:[%s2433_s16 + $0x210] sm:$0xff] %v1486_v29  ;;  %v1489_v41 = vmul.f32 0.16666667, %v1169_v33 }
  0x7e   : > { %v1170_v42 = vmin.f32 %v850_v34, 6.0  ;;  %v1171_v43 = vmin.f32 %v851_v35, 6.0  ;;  %v853_v44 = vmax.f32 %v533_v36, 0.0  ;;  %1807 = vst [vmem:[%s2433_s16 + $0x218] sm:$0xff] %v1487_v38  ;;  %v215_v47 = vld [vmem:[%s2411_s23 + $0x258] sm:$0xff]  ;;  %v216_v48 = vld [vmem:[%s2411_s23 + $0x260] sm:$0xff] }
  0x7f   : > { %v1172_v45 = vmin.f32 %v852_v40, 6.0  ;;  %v217_v49 = vld [vmem:[%s2411_s23 + $0x268] sm:$0xff]  ;;  %1808 = vst [vmem:[%s2433_s16 + $0x220] sm:$0xff] %v1488_v39  ;;  %v854_v54 = vmax.f32 %v534_v46, 0.0  ;;  %v535_v55 = vadd.f32 3.0, %v215_v47  ;;  %v536_v56 = vadd.f32 3.0, %v216_v48 }
  0x80   : > { %v1490_v50 = vmul.f32 0.16666667, %v1170_v42  ;;  %v1491_v51 = vmul.f32 0.16666667, %v1171_v43  ;;  %v1173_v52 = vmin.f32 %v853_v44, 6.0  ;;  %1809 = vst [vmem:[%s2433_s16 + $0x228] sm:$0xff] %v1489_v41 }
  0x81   : > { %v1492_v53 = vmul.f32 0.16666667, %v1172_v45  ;;  %v537_v58 = vadd.f32 3.0, %v217_v49  ;;  %v218_v59 = vld [vmem:[%s2411_s23 + $0x270] sm:$0xff]  ;;  %v219_v60 = vld [vmem:[%s2411_s23 + $0x278] sm:$0xff]  ;;  %v1174_v61 = vmin.f32 %v854_v54, 6.0 }
  0x82   : > { %1810 = vst [vmem:[%s2433_s16 + $0x230] sm:$0xff] %v1490_v50  ;;  %v1493_v57 = vmul.f32 0.16666667, %v1173_v52  ;;  %v855_v62 = vmax.f32 %v535_v55, 0.0  ;;  %v856_v63 = vmax.f32 %v536_v56, 0.0  ;;  %v538_v0 = vadd.f32 3.0, %v218_v59 }
  0x83   : > { %1811 = vst [vmem:[%s2433_s16 + $0x238] sm:$0xff] %v1491_v51  ;;  %v220_v1 = vld [vmem:[%s2411_s23 + $0x280] sm:$0xff]  ;;  %v857_v2 = vmax.f32 %v537_v58, 0.0  ;;  %v539_v3 = vadd.f32 3.0, %v219_v60  ;;  %v221_v5 = vld [vmem:[%s2411_s23 + $0x288] sm:$0xff]  ;;  %v222_v6 = vld [vmem:[%s2411_s23 + $0x290] sm:$0xff] }
  0x84   : > { %1812 = vst [vmem:[%s2433_s16 + $0x240] sm:$0xff] %v1492_v53  ;;  %v540_v4 = vadd.f32 3.0, %v220_v1  ;;  %v1494_v7 = vmul.f32 0.16666667, %v1174_v61  ;;  %v1175_v8 = vmin.f32 %v855_v62, 6.0  ;;  %v1176_v9 = vmin.f32 %v856_v63, 6.0 }
  0x85   : > { %1813 = vst [vmem:[%s2433_s16 + $0x248] sm:$0xff] %v1493_v57  ;;  %v858_v10 = vmax.f32 %v538_v0, 0.0  ;;  %v1177_v11 = vmin.f32 %v857_v2, 6.0  ;;  %v859_v12 = vmax.f32 %v539_v3, 0.0  ;;  %v541_v14 = vadd.f32 3.0, %v221_v5  ;;  %v223_v15 = vld [vmem:[%s2411_s23 + $0x298] sm:$0xff] }
  0x86   : > { %v860_v13 = vmax.f32 %v540_v4, 0.0  ;;  %v224_v16 = vld [vmem:[%s2411_s23 + $0x2a0] sm:$0xff]  ;;  %1814 = vst [vmem:[%s2433_s16 + $0x250] sm:$0xff] %v1494_v7  ;;  %v1495_v17 = vmul.f32 0.16666667, %v1175_v8  ;;  %v225_v24 = vld [vmem:[%s2411_s23 + $0x2a8] sm:$0xff] }
  0x87   : > { %v1496_v18 = vmul.f32 0.16666667, %v1176_v9  ;;  %v1178_v19 = vmin.f32 %v858_v10, 6.0  ;;  %v1497_v20 = vmul.f32 0.16666667, %v1177_v11  ;;  %v1179_v21 = vmin.f32 %v859_v12, 6.0 }
  0x88   : > { %v1180_v22 = vmin.f32 %v860_v13, 6.0  ;;  %v861_v23 = vmax.f32 %v541_v14, 0.0  ;;  %1815 = vst [vmem:[%s2433_s16 + $0x258] sm:$0xff] %v1495_v17  ;;  %v542_v26 = vadd.f32 3.0, %v222_v6  ;;  %v543_v27 = vadd.f32 3.0, %v223_v15  ;;  %v226_v36 = vld [vmem:[%s2411_s23 + $0x2b0] sm:$0xff] }
  0x89   : > { %v1498_v25 = vmul.f32 0.16666667, %v1178_v19  ;;  %v544_v28 = vadd.f32 3.0, %v224_v16  ;;  %1816 = vst [vmem:[%s2433_s16 + $0x260] sm:$0xff] %v1496_v18  ;;  %v1499_v29 = vmul.f32 0.16666667, %v1179_v21 }
  0x8a   : > { %v1500_v30 = vmul.f32 0.16666667, %v1180_v22  ;;  %v1181_v31 = vmin.f32 %v861_v23, 6.0  ;;  %1817 = vst [vmem:[%s2433_s16 + $0x268] sm:$0xff] %v1497_v20  ;;  %v862_v32 = vmax.f32 %v542_v26, 0.0  ;;  %v863_v33 = vmax.f32 %v543_v27, 0.0 }
  0x8b   : > { %v864_v34 = vmax.f32 %v544_v28, 0.0  ;;  %v545_v35 = vadd.f32 3.0, %v225_v24  ;;  %1818 = vst [vmem:[%s2433_s16 + $0x270] sm:$0xff] %v1498_v25  ;;  %v546_v38 = vadd.f32 3.0, %v226_v36  ;;  %v227_v39 = vld [vmem:[%s2411_s23 + $0x2b8] sm:$0xff]  ;;  %v228_v40 = vld [vmem:[%s2411_s23 + $0x2c0] sm:$0xff] }
  0x8c   : > { %v1501_v37 = vmul.f32 0.16666667, %v1181_v31  ;;  %1819 = vst [vmem:[%s2433_s16 + $0x278] sm:$0xff] %v1499_v29  ;;  %v1182_v41 = vmin.f32 %v862_v32, 6.0  ;;  %v1183_v42 = vmin.f32 %v863_v33, 6.0  ;;  %v229_v45 = vld [vmem:[%s2411_s23 + $0x2c8] sm:$0xff] }
  0x8d   : > { %v1184_v43 = vmin.f32 %v864_v34, 6.0  ;;  %v865_v44 = vmax.f32 %v545_v35, 0.0  ;;  %1820 = vst [vmem:[%s2433_s16 + $0x280] sm:$0xff] %v1500_v30  ;;  %v866_v46 = vmax.f32 %v546_v38, 0.0  ;;  %v547_v47 = vadd.f32 3.0, %v227_v39  ;;  %v230_v50 = vld [vmem:[%s2411_s23 + $0x2d0] sm:$0xff] }
  0x8e   : > { %v548_v48 = vadd.f32 3.0, %v228_v40  ;;  %v549_v49 = vadd.f32 3.0, %v229_v45  ;;  %1821 = vst [vmem:[%s2433_s16 + $0x288] sm:$0xff] %v1501_v37  ;;  %v1502_v51 = vmul.f32 0.16666667, %v1182_v41  ;;  %v231_v58 = vld [vmem:[%s2411_s23 + $0x2d8] sm:$0xff] }
  0x8f   : > { %v1503_v52 = vmul.f32 0.16666667, %v1183_v42  ;;  %v1185_v53 = vmin.f32 %v865_v44, 6.0  ;;  %v1504_v54 = vmul.f32 0.16666667, %v1184_v43  ;;  %v1186_v55 = vmin.f32 %v866_v46, 6.0 }
  0x90   : > { %v867_v56 = vmax.f32 %v547_v47, 0.0  ;;  %v868_v57 = vmax.f32 %v548_v48, 0.0  ;;  %1822 = vst [vmem:[%s2433_s16 + $0x290] sm:$0xff] %v1502_v51  ;;  %v869_v60 = vmax.f32 %v549_v49, 0.0  ;;  %v550_v61 = vadd.f32 3.0, %v230_v50  ;;  %v232_v2 = vld [vmem:[%s2411_s23 + $0x2e0] sm:$0xff] }
  0x91   : > { %v1505_v59 = vmul.f32 0.16666667, %v1185_v53  ;;  %v551_v62 = vadd.f32 3.0, %v231_v58  ;;  %1823 = vst [vmem:[%s2433_s16 + $0x298] sm:$0xff] %v1503_v52  ;;  %v1506_v63 = vmul.f32 0.16666667, %v1186_v55 }
  0x92   : > { %v1187_v0 = vmin.f32 %v867_v56, 6.0  ;;  %v1188_v1 = vmin.f32 %v868_v57, 6.0  ;;  %1824 = vst [vmem:[%s2433_s16 + $0x2a0] sm:$0xff] %v1504_v54  ;;  %v1189_v3 = vmin.f32 %v869_v60, 6.0  ;;  %v870_v4 = vmax.f32 %v550_v61, 0.0  ;;  %v233_v7 = vld [vmem:[%s2411_s23 + $0x2e8] sm:$0xff] }
  0x93   : > { %v871_v5 = vmax.f32 %v551_v62, 0.0  ;;  %v552_v6 = vadd.f32 3.0, %v232_v2  ;;  %1825 = vst [vmem:[%s2433_s16 + $0x2a8] sm:$0xff] %v1505_v59  ;;  %v553_v10 = vadd.f32 3.0, %v233_v7  ;;  %v234_v16 = vld [vmem:[%s2411_s23 + $0x2f0] sm:$0xff]  ;;  %v235_v17 = vld [vmem:[%s2411_s23 + $0x2f8] sm:$0xff] }
  0x94   : > { %v1507_v8 = vmul.f32 0.16666667, %v1187_v0  ;;  %v1508_v9 = vmul.f32 0.16666667, %v1188_v1  ;;  %1826 = vst [vmem:[%s2433_s16 + $0x2b0] sm:$0xff] %v1506_v63  ;;  %v1190_v12 = vmin.f32 %v870_v4, 6.0 }
  0x95   : > { %v1509_v11 = vmul.f32 0.16666667, %v1189_v3  ;;  %v1191_v13 = vmin.f32 %v871_v5, 6.0  ;;  %v872_v14 = vmax.f32 %v552_v6, 0.0  ;;  %v873_v15 = vmax.f32 %v553_v10, 0.0  ;;  %v236_v18 = vld [vmem:[%s2411_s23 + $0x300] sm:$0xff] }
  0x96   : > { %1827 = vst [vmem:[%s2433_s16 + $0x2b8] sm:$0xff] %v1507_v8  ;;  %v1510_v19 = vmul.f32 0.16666667, %v1190_v12  ;;  %v554_v23 = vadd.f32 3.0, %v234_v16  ;;  %v555_v24 = vadd.f32 3.0, %v235_v17  ;;  %v556_v25 = vadd.f32 3.0, %v236_v18 }
  0x97   : > { %1828 = vst [vmem:[%s2433_s16 + $0x2c0] sm:$0xff] %v1508_v9  ;;  %v1511_v20 = vmul.f32 0.16666667, %v1191_v13  ;;  %v1192_v21 = vmin.f32 %v872_v14, 6.0  ;;  %v1193_v22 = vmin.f32 %v873_v15, 6.0  ;;  %v237_v26 = vld [vmem:[%s2411_s23 + $0x308] sm:$0xff] }
  0x98   : > { %1829 = vst [vmem:[%s2433_s16 + $0x2c8] sm:$0xff] %v1509_v11  ;;  %v557_v28 = vadd.f32 3.0, %v237_v26  ;;  %v238_v29 = vld [vmem:[%s2411_s23 + $0x310] sm:$0xff]  ;;  %v239_v30 = vld [vmem:[%s2411_s23 + $0x318] sm:$0xff]  ;;  %v874_v32 = vmax.f32 %v554_v23, 0.0  ;;  %v875_v33 = vmax.f32 %v555_v24, 0.0 }
  0x99   : > { %1830 = vst [vmem:[%s2433_s16 + $0x2d0] sm:$0xff] %v1510_v19  ;;  %v1512_v27 = vmul.f32 0.16666667, %v1192_v21  ;;  %v1513_v31 = vmul.f32 0.16666667, %v1193_v22  ;;  %v876_v34 = vmax.f32 %v556_v25, 0.0 }
  0x9a   : > { %1831 = vst [vmem:[%s2433_s16 + $0x2d8] sm:$0xff] %v1511_v20  ;;  %v877_v35 = vmax.f32 %v557_v28, 0.0  ;;  %v558_v36 = vadd.f32 3.0, %v238_v29  ;;  %v559_v37 = vadd.f32 3.0, %v239_v30  ;;  %v240_v38 = vld [vmem:[%s2411_s23 + $0x320] sm:$0xff]  ;;  %v241_v39 = vld [vmem:[%s2411_s23 + $0x328] sm:$0xff] }
  0x9b   : > { %1832 = vst [vmem:[%s2433_s16 + $0x2e0] sm:$0xff] %v1512_v27  ;;  %v1194_v40 = vmin.f32 %v874_v32, 6.0  ;;  %v1195_v41 = vmin.f32 %v875_v33, 6.0  ;;  %v1196_v42 = vmin.f32 %v876_v34, 6.0  ;;  %v560_v43 = vadd.f32 3.0, %v240_v38  ;;  %v242_v44 = vld [vmem:[%s2411_s23 + $0x330] sm:$0xff] }
  0x9c   : > { %1833 = vst [vmem:[%s2433_s16 + $0x2e8] sm:$0xff] %v1513_v31  ;;  %v1197_v45 = vmin.f32 %v877_v35, 6.0  ;;  %v878_v46 = vmax.f32 %v558_v36, 0.0  ;;  %v879_v47 = vmax.f32 %v559_v37, 0.0  ;;  %v561_v48 = vadd.f32 3.0, %v241_v39  ;;  %v243_v49 = vld [vmem:[%s2411_s23 + $0x338] sm:$0xff] }
  0x9d   : > { %v244_v50 = vld [vmem:[%s2411_s23 + $0x340] sm:$0xff]  ;;  %v1514_v51 = vmul.f32 0.16666667, %v1194_v40  ;;  %v1515_v52 = vmul.f32 0.16666667, %v1195_v41  ;;  %v880_v57 = vmax.f32 %v560_v43, 0.0 }
  0x9e   : > { %v1516_v53 = vmul.f32 0.16666667, %v1196_v42  ;;  %v1517_v54 = vmul.f32 0.16666667, %v1197_v45  ;;  %v1198_v55 = vmin.f32 %v878_v46, 6.0  ;;  %v1199_v56 = vmin.f32 %v879_v47, 6.0 }
  0x9f   : > { %v245_v58 = vld [vmem:[%s2411_s23 + $0x348] sm:$0xff]  ;;  %1834 = vst [vmem:[%s2433_s16 + $0x2f0] sm:$0xff] %v1514_v51  ;;  %v881_v59 = vmax.f32 %v561_v48, 0.0  ;;  %v562_v60 = vadd.f32 3.0, %v242_v44  ;;  %v563_v61 = vadd.f32 3.0, %v243_v49  ;;  %v564_v62 = vadd.f32 3.0, %v244_v50 }
  0xa0   : > { %v246_v63 = vld [vmem:[%s2411_s23 + $0x350] sm:$0xff]  ;;  %1835 = vst [vmem:[%s2433_s16 + $0x2f8] sm:$0xff] %v1515_v52  ;;  %v1518_v0 = vmul.f32 0.16666667, %v1198_v55  ;;  %v1519_v1 = vmul.f32 0.16666667, %v1199_v56 }
  0xa1   : > { %v1200_v2 = vmin.f32 %v880_v57, 6.0  ;;  %1836 = vst [vmem:[%s2433_s16 + $0x300] sm:$0xff] %v1516_v53  ;;  %v1201_v3 = vmin.f32 %v881_v59, 6.0  ;;  %v882_v4 = vmax.f32 %v562_v60, 0.0  ;;  %v883_v5 = vmax.f32 %v563_v61, 0.0  ;;  %v247_v7 = vld [vmem:[%s2411_s23 + $0x358] sm:$0xff] }
  0xa2   : > { %v884_v6 = vmax.f32 %v564_v62, 0.0  ;;  %1837 = vst [vmem:[%s2433_s16 + $0x308] sm:$0xff] %v1517_v54  ;;  %v565_v9 = vadd.f32 3.0, %v245_v58  ;;  %v566_v10 = vadd.f32 3.0, %v246_v63  ;;  %v567_v11 = vadd.f32 3.0, %v247_v7  ;;  %v248_v19 = vld [vmem:[%s2411_s23 + $0x360] sm:$0xff] }
  0xa3   : > { %v1520_v8 = vmul.f32 0.16666667, %v1200_v2  ;;  %1838 = vst [vmem:[%s2433_s16 + $0x310] sm:$0xff] %v1518_v0  ;;  %v1521_v12 = vmul.f32 0.16666667, %v1201_v3  ;;  %v1202_v13 = vmin.f32 %v882_v4, 6.0 }
  0xa4   : > { %v1203_v14 = vmin.f32 %v883_v5, 6.0  ;;  %v1204_v15 = vmin.f32 %v884_v6, 6.0  ;;  %1839 = vst [vmem:[%s2433_s16 + $0x318] sm:$0xff] %v1519_v1  ;;  %v885_v16 = vmax.f32 %v565_v9, 0.0  ;;  %v886_v17 = vmax.f32 %v566_v10, 0.0  ;;  %v249_v20 = vld [vmem:[%s2411_s23 + $0x368] sm:$0xff] }
  0xa5   : > { %v887_v18 = vmax.f32 %v567_v11, 0.0  ;;  %1840 = vst [vmem:[%s2433_s16 + $0x320] sm:$0xff] %v1520_v8  ;;  %v1522_v21 = vmul.f32 0.16666667, %v1202_v13  ;;  %v568_v23 = vadd.f32 3.0, %v248_v19  ;;  %v569_v29 = vadd.f32 3.0, %v249_v20 }
  0xa6   : > { %v1523_v22 = vmul.f32 0.16666667, %v1203_v14  ;;  %1841 = vst [vmem:[%s2433_s16 + $0x328] sm:$0xff] %v1521_v12  ;;  %v1524_v24 = vmul.f32 0.16666667, %v1204_v15  ;;  %v1205_v25 = vmin.f32 %v885_v16, 6.0 }
  0xa7   : > { %v1206_v26 = vmin.f32 %v886_v17, 6.0  ;;  %v1207_v27 = vmin.f32 %v887_v18, 6.0  ;;  %1842 = vst [vmem:[%s2433_s16 + $0x330] sm:$0xff] %v1522_v21  ;;  %v888_v28 = vmax.f32 %v568_v23, 0.0  ;;  %v250_v30 = vld [vmem:[%s2411_s23 + $0x370] sm:$0xff]  ;;  %v251_v31 = vld [vmem:[%s2411_s23 + $0x378] sm:$0xff] }
  0xa8   : > { %v252_v32 = vld [vmem:[%s2411_s23 + $0x380] sm:$0xff]  ;;  %1843 = vst [vmem:[%s2433_s16 + $0x338] sm:$0xff] %v1523_v22  ;;  %v1525_v33 = vmul.f32 0.16666667, %v1205_v25  ;;  %v570_v35 = vadd.f32 3.0, %v250_v30  ;;  %v889_v38 = vmax.f32 %v569_v29, 0.0 }
  0xa9   : > { %v1526_v34 = vmul.f32 0.16666667, %v1206_v26  ;;  %1844 = vst [vmem:[%s2433_s16 + $0x340] sm:$0xff] %v1524_v24  ;;  %v1527_v36 = vmul.f32 0.16666667, %v1207_v27  ;;  %v1208_v37 = vmin.f32 %v888_v28, 6.0 }
  0xaa   : > { %v571_v39 = vadd.f32 3.0, %v251_v31  ;;  %1845 = vst [vmem:[%s2433_s16 + $0x348] sm:$0xff] %v1525_v33  ;;  %v890_v40 = vmax.f32 %v570_v35, 0.0  ;;  %v572_v41 = vadd.f32 3.0, %v252_v32  ;;  %v253_v42 = vld [vmem:[%s2411_s23 + $0x388] sm:$0xff]  ;;  %v254_v43 = vld [vmem:[%s2411_s23 + $0x390] sm:$0xff] }
  0xab   : > { %v255_v44 = vld [vmem:[%s2411_s23 + $0x398] sm:$0xff]  ;;  %1846 = vst [vmem:[%s2433_s16 + $0x350] sm:$0xff] %v1526_v34  ;;  %v1528_v45 = vmul.f32 0.16666667, %v1208_v37  ;;  %v1209_v46 = vmin.f32 %v889_v38, 6.0  ;;  %v573_v48 = vadd.f32 3.0, %v253_v42 }
  0xac   : > { %v891_v47 = vmax.f32 %v571_v39, 0.0  ;;  %1847 = vst [vmem:[%s2433_s16 + $0x358] sm:$0xff] %v1527_v36  ;;  %v1210_v49 = vmin.f32 %v890_v40, 6.0  ;;  %v892_v50 = vmax.f32 %v572_v41, 0.0  ;;  %v574_v51 = vadd.f32 3.0, %v254_v43  ;;  %v256_v53 = vld [vmem:[%s2411_s23 + $0x3a0] sm:$0xff] }
  0xad   : > { %v575_v52 = vadd.f32 3.0, %v255_v44  ;;  %1848 = vst [vmem:[%s2433_s16 + $0x360] sm:$0xff] %v1528_v45  ;;  %v1529_v54 = vmul.f32 0.16666667, %v1209_v46  ;;  %v893_v56 = vmax.f32 %v573_v48, 0.0  ;;  %v576_v57 = vadd.f32 3.0, %v256_v53 }
  0xae   : > { %v1211_v55 = vmin.f32 %v891_v47, 6.0  ;;  %v1530_v58 = vmul.f32 0.16666667, %v1210_v49  ;;  %v1212_v59 = vmin.f32 %v892_v50, 6.0  ;;  %v894_v60 = vmax.f32 %v574_v51, 0.0  ;;  %v257_v62 = vld [vmem:[%s2411_s23 + $0x3a8] sm:$0xff] }
  0xaf   : > { %v895_v61 = vmax.f32 %v575_v52, 0.0  ;;  %1849 = vst [vmem:[%s2433_s16 + $0x368] sm:$0xff] %v1529_v54  ;;  %v1213_v0 = vmin.f32 %v893_v56, 6.0  ;;  %v896_v1 = vmax.f32 %v576_v57, 0.0  ;;  %v577_v2 = vadd.f32 3.0, %v257_v62  ;;  %v258_v6 = vld [vmem:[%s2411_s23 + $0x3b0] sm:$0xff] }
  0xb0   : > { %v1531_v63 = vmul.f32 0.16666667, %v1211_v55  ;;  %1850 = vst [vmem:[%s2433_s16 + $0x370] sm:$0xff] %v1530_v58  ;;  %v1532_v3 = vmul.f32 0.16666667, %v1212_v59  ;;  %v1214_v4 = vmin.f32 %v894_v60, 6.0 }
  0xb1   : > { %v1215_v5 = vmin.f32 %v895_v61, 6.0  ;;  %v1533_v7 = vmul.f32 0.16666667, %v1213_v0  ;;  %v1216_v8 = vmin.f32 %v896_v1, 6.0  ;;  %v897_v9 = vmax.f32 %v577_v2, 0.0  ;;  %v259_v13 = vld [vmem:[%s2411_s23 + $0x3b8] sm:$0xff] }
  0xb2   : > { %1851 = vst [vmem:[%s2433_s16 + $0x378] sm:$0xff] %v1531_v63  ;;  %v578_v10 = vadd.f32 3.0, %v258_v6  ;;  %v1534_v11 = vmul.f32 0.16666667, %v1214_v4  ;;  %v579_v17 = vadd.f32 3.0, %v259_v13  ;;  %v260_v18 = vld [vmem:[%s2411_s23 + $0x3c0] sm:$0xff] }
  0xb3   : > { %1852 = vst [vmem:[%s2433_s16 + $0x380] sm:$0xff] %v1532_v3  ;;  %v1535_v12 = vmul.f32 0.16666667, %v1215_v5  ;;  %v1536_v14 = vmul.f32 0.16666667, %v1216_v8  ;;  %v1217_v15 = vmin.f32 %v897_v9, 6.0 }
  0xb4   : > { %1853 = vst [vmem:[%s2433_s16 + $0x388] sm:$0xff] %v1533_v7  ;;  %v898_v16 = vmax.f32 %v578_v10, 0.0  ;;  %v261_v19 = vld [vmem:[%s2411_s23 + $0x3c8] sm:$0xff]  ;;  %v262_v20 = vld [vmem:[%s2411_s23 + $0x3d0] sm:$0xff]  ;;  %v899_v23 = vmax.f32 %v579_v17, 0.0  ;;  %v580_v24 = vadd.f32 3.0, %v260_v18 }
  0xb5   : > { %1854 = vst [vmem:[%s2433_s16 + $0x390] sm:$0xff] %v1534_v11  ;;  %v1537_v21 = vmul.f32 0.16666667, %v1217_v15  ;;  %v581_v25 = vadd.f32 3.0, %v261_v19  ;;  %v582_v26 = vadd.f32 3.0, %v262_v20  ;;  %v263_v27 = vld [vmem:[%s2411_s23 + $0x3d8] sm:$0xff] }
  0xb6   : > { %1855 = vst [vmem:[%s2433_s16 + $0x398] sm:$0xff] %v1535_v12  ;;  %v1218_v22 = vmin.f32 %v898_v16, 6.0  ;;  %v264_v28 = vld [vmem:[%s2411_s23 + $0x3e0] sm:$0xff]  ;;  %v265_v29 = vld [vmem:[%s2411_s23 + $0x3e8] sm:$0xff]  ;;  %v1219_v31 = vmin.f32 %v899_v23, 6.0  ;;  %v900_v32 = vmax.f32 %v580_v24, 0.0 }
  0xb7   : > { %1856 = vst [vmem:[%s2433_s16 + $0x3a0] sm:$0xff] %v1536_v14  ;;  %v583_v33 = vadd.f32 3.0, %v263_v27  ;;  %v901_v34 = vmax.f32 %v581_v25, 0.0  ;;  %v902_v35 = vmax.f32 %v582_v26, 0.0  ;;  %v584_v36 = vadd.f32 3.0, %v264_v28  ;;  %v266_v38 = vld [vmem:[%s2411_s23 + $0x3f0] sm:$0xff] }
  0xb8   : > { %1857 = vst [vmem:[%s2433_s16 + $0x3a8] sm:$0xff] %v1537_v21  ;;  %v1538_v30 = vmul.f32 0.16666667, %v1218_v22  ;;  %v585_v37 = vadd.f32 3.0, %v265_v29  ;;  %v267_v39 = vld [vmem:[%s2411_s23 + $0x3f8] sm:$0xff]  ;;  %v1220_v41 = vmin.f32 %v900_v32, 6.0 }
  0xb9   : > { %v1539_v40 = vmul.f32 0.16666667, %v1219_v31  ;;  %v903_v42 = vmax.f32 %v583_v33, 0.0  ;;  %v586_v43 = vadd.f32 3.0, %v266_v38  ;;  %v1221_v44 = vmin.f32 %v901_v34, 6.0  ;;  %v268_v48 = vld [vmem:[%s2411_s23 + $0x400] sm:$0xff] }
  0xba   : > { %1858 = vst [vmem:[%s2433_s16 + $0x3b0] sm:$0xff] %v1538_v30  ;;  %v1222_v45 = vmin.f32 %v902_v35, 6.0  ;;  %v904_v46 = vmax.f32 %v584_v36, 0.0  ;;  %v905_v47 = vmax.f32 %v585_v37, 0.0  ;;  %v269_v49 = vld [vmem:[%s2411_s23 + $0x408] sm:$0xff]  ;;  %v587_v53 = vadd.f32 3.0, %v267_v39 }
  0xbb   : > { %1859 = vst [vmem:[%s2433_s16 + $0x3b8] sm:$0xff] %v1539_v40  ;;  %v1540_v50 = vmul.f32 0.16666667, %v1220_v41  ;;  %v1223_v51 = vmin.f32 %v903_v42, 6.0  ;;  %v906_v52 = vmax.f32 %v586_v43, 0.0  ;;  %v588_v61 = vadd.f32 3.0, %v268_v48 }
  0xbc   : > { %v1541_v54 = vmul.f32 0.16666667, %v1221_v44  ;;  %v1542_v55 = vmul.f32 0.16666667, %v1222_v45  ;;  %v1224_v56 = vmin.f32 %v904_v46, 6.0  ;;  %v1225_v57 = vmin.f32 %v905_v47, 6.0 }
  0xbd   : > { %1860 = vst [vmem:[%s2433_s16 + $0x3c0] sm:$0xff] %v1540_v50  ;;  %v1543_v58 = vmul.f32 0.16666667, %v1223_v51  ;;  %v1226_v59 = vmin.f32 %v906_v52, 6.0  ;;  %v907_v60 = vmax.f32 %v587_v53, 0.0  ;;  %v589_v0 = vadd.f32 3.0, %v269_v49 }
  0xbe   : > { %1861 = vst [vmem:[%s2433_s16 + $0x3c8] sm:$0xff] %v1541_v54  ;;  %v1544_v62 = vmul.f32 0.16666667, %v1224_v56  ;;  %v1545_v63 = vmul.f32 0.16666667, %v1225_v57  ;;  %v908_v3 = vmax.f32 %v588_v61, 0.0 }
  0xbf   : > { %1862 = vst [vmem:[%s2433_s16 + $0x3d0] sm:$0xff] %v1542_v55  ;;  %v1546_v1 = vmul.f32 0.16666667, %v1226_v59  ;;  %v1227_v2 = vmin.f32 %v907_v60, 6.0  ;;  %v270_v4 = vld [vmem:[%s2411_s23 + $0x410] sm:$0xff]  ;;  %v909_v5 = vmax.f32 %v589_v0, 0.0 }
  0xc0   : > { %1863 = vst [vmem:[%s2433_s16 + $0x3d8] sm:$0xff] %v1543_v58  ;;  %v590_v6 = vadd.f32 3.0, %v270_v4  ;;  %v271_v7 = vld [vmem:[%s2411_s23 + $0x418] sm:$0xff]  ;;  %v272_v8 = vld [vmem:[%s2411_s23 + $0x420] sm:$0xff]  ;;  %v273_v9 = vld [vmem:[%s2411_s23 + $0x428] sm:$0xff]  ;;  %v1228_v11 = vmin.f32 %v908_v3, 6.0 }
  0xc1   : > { %1864 = vst [vmem:[%s2433_s16 + $0x3e0] sm:$0xff] %v1544_v62  ;;  %v1547_v10 = vmul.f32 0.16666667, %v1227_v2  ;;  %v591_v12 = vadd.f32 3.0, %v271_v7  ;;  %v592_v13 = vadd.f32 3.0, %v272_v8  ;;  %v1229_v14 = vmin.f32 %v909_v5, 6.0 }
  0xc2   : > { %1865 = vst [vmem:[%s2433_s16 + $0x3e8] sm:$0xff] %v1545_v63  ;;  %v910_v15 = vmax.f32 %v590_v6, 0.0  ;;  %v593_v16 = vadd.f32 3.0, %v273_v9  ;;  %v274_v17 = vld [vmem:[%s2411_s23 + $0x430] sm:$0xff]  ;;  %v275_v18 = vld [vmem:[%s2411_s23 + $0x438] sm:$0xff]  ;;  %v276_v30 = vld [vmem:[%s2411_s23 + $0x440] sm:$0xff] }
  0xc3   : > { %1866 = vst [vmem:[%s2433_s16 + $0x3f0] sm:$0xff] %v1546_v1  ;;  %v1548_v19 = vmul.f32 0.16666667, %v1228_v11  ;;  %v911_v20 = vmax.f32 %v591_v12, 0.0  ;;  %v912_v21 = vmax.f32 %v592_v13, 0.0  ;;  %v594_v22 = vadd.f32 3.0, %v274_v17 }
  0xc4   : > { %1867 = vst [vmem:[%s2433_s16 + $0x3f8] sm:$0xff] %v1547_v10  ;;  %v1549_v23 = vmul.f32 0.16666667, %v1229_v14  ;;  %v1230_v24 = vmin.f32 %v910_v15, 6.0  ;;  %v913_v25 = vmax.f32 %v593_v16, 0.0  ;;  %v595_v26 = vadd.f32 3.0, %v275_v18 }
  0xc5   : > { %1868 = vst [vmem:[%s2433_s16 + $0x400] sm:$0xff] %v1548_v19  ;;  %v1231_v27 = vmin.f32 %v911_v20, 6.0  ;;  %v1232_v28 = vmin.f32 %v912_v21, 6.0  ;;  %v914_v29 = vmax.f32 %v594_v22, 0.0  ;;  %v277_v31 = vld [vmem:[%s2411_s23 + $0x448] sm:$0xff]  ;;  %v596_v35 = vadd.f32 3.0, %v276_v30 }
  0xc6   : > { %1869 = vst [vmem:[%s2433_s16 + $0x408] sm:$0xff] %v1549_v23  ;;  %v1550_v32 = vmul.f32 0.16666667, %v1230_v24  ;;  %v1233_v33 = vmin.f32 %v913_v25, 6.0  ;;  %v915_v34 = vmax.f32 %v595_v26, 0.0  ;;  %v597_v39 = vadd.f32 3.0, %v277_v31 }
  0xc7   : > { %v1551_v36 = vmul.f32 0.16666667, %v1231_v27  ;;  %v1552_v37 = vmul.f32 0.16666667, %v1232_v28  ;;  %v1234_v38 = vmin.f32 %v914_v29, 6.0  ;;  %v916_v42 = vmax.f32 %v596_v35, 0.0 }
  0xc8   : > { %1870 = vst [vmem:[%s2433_s16 + $0x410] sm:$0xff] %v1550_v32  ;;  %v1553_v40 = vmul.f32 0.16666667, %v1233_v33  ;;  %v1235_v41 = vmin.f32 %v915_v34, 6.0  ;;  %v278_v43 = vld [vmem:[%s2411_s23 + $0x450] sm:$0xff]  ;;  %v917_v45 = vmax.f32 %v597_v39, 0.0 }
  0xc9   : > { %1871 = vst [vmem:[%s2433_s16 + $0x418] sm:$0xff] %v1551_v36  ;;  %v1554_v44 = vmul.f32 0.16666667, %v1234_v38  ;;  %v598_v46 = vadd.f32 3.0, %v278_v43  ;;  %v279_v47 = vld [vmem:[%s2411_s23 + $0x458] sm:$0xff]  ;;  %v1236_v49 = vmin.f32 %v916_v42, 6.0 }
  0xca   : > { %1872 = vst [vmem:[%s2433_s16 + $0x420] sm:$0xff] %v1552_v37  ;;  %v1555_v48 = vmul.f32 0.16666667, %v1235_v41  ;;  %v599_v50 = vadd.f32 3.0, %v279_v47  ;;  %v280_v51 = vld [vmem:[%s2411_s23 + $0x460] sm:$0xff]  ;;  %v1237_v52 = vmin.f32 %v917_v45, 6.0 }
  0xcb   : > { %1873 = vst [vmem:[%s2433_s16 + $0x428] sm:$0xff] %v1553_v40  ;;  %v918_v53 = vmax.f32 %v598_v46, 0.0  ;;  %v600_v54 = vadd.f32 3.0, %v280_v51  ;;  %v281_v55 = vld [vmem:[%s2411_s23 + $0x468] sm:$0xff]  ;;  %v282_v56 = vld [vmem:[%s2411_s23 + $0x470] sm:$0xff]  ;;  %v283_v0 = vld [vmem:[%s2411_s23 + $0x478] sm:$0xff] }
  0xcc   : > { %1874 = vst [vmem:[%s2433_s16 + $0x430] sm:$0xff] %v1554_v44  ;;  %v1556_v57 = vmul.f32 0.16666667, %v1236_v49  ;;  %v919_v58 = vmax.f32 %v599_v50, 0.0  ;;  %v601_v59 = vadd.f32 3.0, %v281_v55  ;;  %v602_v60 = vadd.f32 3.0, %v282_v56 }
  0xcd   : > { %1875 = vst [vmem:[%s2433_s16 + $0x438] sm:$0xff] %v1555_v48  ;;  %v1557_v61 = vmul.f32 0.16666667, %v1237_v52  ;;  %v1238_v62 = vmin.f32 %v918_v53, 6.0  ;;  %v920_v63 = vmax.f32 %v600_v54, 0.0  ;;  %v603_v4 = vadd.f32 3.0, %v283_v0 }
  0xce   : > { %1876 = vst [vmem:[%s2433_s16 + $0x440] sm:$0xff] %v1556_v57  ;;  %v1239_v1 = vmin.f32 %v919_v58, 6.0  ;;  %v921_v2 = vmax.f32 %v601_v59, 0.0  ;;  %v922_v3 = vmax.f32 %v602_v60, 0.0  ;;  %v284_v5 = vld [vmem:[%s2411_s23 + $0x480] sm:$0xff]  ;;  %v285_v9 = vld [vmem:[%s2411_s23 + $0x488] sm:$0xff] }
  0xcf   : > { %1877 = vst [vmem:[%s2433_s16 + $0x448] sm:$0xff] %v1557_v61  ;;  %v1558_v6 = vmul.f32 0.16666667, %v1238_v62  ;;  %v1240_v7 = vmin.f32 %v920_v63, 6.0  ;;  %v604_v8 = vadd.f32 3.0, %v284_v5  ;;  %v923_v13 = vmax.f32 %v603_v4, 0.0 }
  0xd0   : > { %v1559_v10 = vmul.f32 0.16666667, %v1239_v1  ;;  %v1241_v11 = vmin.f32 %v921_v2, 6.0  ;;  %v1242_v12 = vmin.f32 %v922_v3, 6.0  ;;  %v286_v14 = vld [vmem:[%s2411_s23 + $0x490] sm:$0xff]  ;;  %v605_v17 = vadd.f32 3.0, %v285_v9 }
  0xd1   : > { %1878 = vst [vmem:[%s2433_s16 + $0x450] sm:$0xff] %v1558_v6  ;;  %v1560_v15 = vmul.f32 0.16666667, %v1240_v7  ;;  %v924_v16 = vmax.f32 %v604_v8, 0.0  ;;  %v606_v18 = vadd.f32 3.0, %v286_v14  ;;  %v1243_v21 = vmin.f32 %v923_v13, 6.0 }
  0xd2   : > { %1879 = vst [vmem:[%s2433_s16 + $0x458] sm:$0xff] %v1559_v10  ;;  %v1561_v19 = vmul.f32 0.16666667, %v1241_v11  ;;  %v1562_v20 = vmul.f32 0.16666667, %v1242_v12  ;;  %v925_v23 = vmax.f32 %v605_v17, 0.0 }
  0xd3   : > { %1880 = vst [vmem:[%s2433_s16 + $0x460] sm:$0xff] %v1560_v15  ;;  %v1244_v22 = vmin.f32 %v924_v16, 6.0  ;;  %v926_v24 = vmax.f32 %v606_v18, 0.0  ;;  %v287_v25 = vld [vmem:[%s2411_s23 + $0x498] sm:$0xff]  ;;  %v288_v26 = vld [vmem:[%s2411_s23 + $0x4a0] sm:$0xff]  ;;  %v289_v30 = vld [vmem:[%s2411_s23 + $0x4a8] sm:$0xff] }
  0xd4   : > { %1881 = vst [vmem:[%s2433_s16 + $0x468] sm:$0xff] %v1561_v19  ;;  %v1563_v27 = vmul.f32 0.16666667, %v1243_v21  ;;  %v607_v28 = vadd.f32 3.0, %v287_v25  ;;  %v608_v29 = vadd.f32 3.0, %v288_v26  ;;  %v1245_v32 = vmin.f32 %v925_v23, 6.0 }
  0xd5   : > { %1882 = vst [vmem:[%s2433_s16 + $0x470] sm:$0xff] %v1562_v20  ;;  %v1564_v31 = vmul.f32 0.16666667, %v1244_v22  ;;  %v1246_v33 = vmin.f32 %v926_v24, 6.0  ;;  %v609_v34 = vadd.f32 3.0, %v289_v30  ;;  %v290_v37 = vld [vmem:[%s2411_s23 + $0x4b0] sm:$0xff] }
  0xd6   : > { %1883 = vst [vmem:[%s2433_s16 + $0x478] sm:$0xff] %v1563_v27  ;;  %v927_v35 = vmax.f32 %v607_v28, 0.0  ;;  %v928_v36 = vmax.f32 %v608_v29, 0.0  ;;  %v291_v38 = vld [vmem:[%s2411_s23 + $0x4b8] sm:$0xff]  ;;  %v292_v39 = vld [vmem:[%s2411_s23 + $0x4c0] sm:$0xff]  ;;  %v610_v45 = vadd.f32 3.0, %v290_v37 }
  0xd7   : > { %1884 = vst [vmem:[%s2433_s16 + $0x480] sm:$0xff] %v1564_v31  ;;  %v1565_v40 = vmul.f32 0.16666667, %v1245_v32  ;;  %v1566_v41 = vmul.f32 0.16666667, %v1246_v33  ;;  %v929_v42 = vmax.f32 %v609_v34, 0.0 }
  0xd8   : > { %v1247_v43 = vmin.f32 %v927_v35, 6.0  ;;  %v1248_v44 = vmin.f32 %v928_v36, 6.0  ;;  %v611_v46 = vadd.f32 3.0, %v291_v38  ;;  %v293_v47 = vld [vmem:[%s2411_s23 + $0x4c8] sm:$0xff]  ;;  %v294_v48 = vld [vmem:[%s2411_s23 + $0x4d0] sm:$0xff]  ;;  %v612_v50 = vadd.f32 3.0, %v292_v39 }
  0xd9   : > { %1885 = vst [vmem:[%s2433_s16 + $0x488] sm:$0xff] %v1565_v40  ;;  %v1249_v49 = vmin.f32 %v929_v42, 6.0  ;;  %v613_v51 = vadd.f32 3.0, %v293_v47  ;;  %v614_v52 = vadd.f32 3.0, %v294_v48  ;;  %v295_v53 = vld [vmem:[%s2411_s23 + $0x4d8] sm:$0xff]  ;;  %v930_v56 = vmax.f32 %v610_v45, 0.0 }
  0xda   : > { %1886 = vst [vmem:[%s2433_s16 + $0x490] sm:$0xff] %v1566_v41  ;;  %v1567_v54 = vmul.f32 0.16666667, %v1247_v43  ;;  %v1568_v55 = vmul.f32 0.16666667, %v1248_v44  ;;  %v931_v58 = vmax.f32 %v611_v46, 0.0 }
  0xdb   : > { %v1569_v57 = vmul.f32 0.16666667, %v1249_v49  ;;  %v932_v59 = vmax.f32 %v612_v50, 0.0  ;;  %v933_v60 = vmax.f32 %v613_v51, 0.0  ;;  %v296_v61 = vld [vmem:[%s2411_s23 + $0x4e0] sm:$0xff]  ;;  %v1250_v62 = vmin.f32 %v930_v56, 6.0 }
  0xdc   : > { %1887 = vst [vmem:[%s2433_s16 + $0x498] sm:$0xff] %v1567_v54  ;;  %v934_v63 = vmax.f32 %v614_v52, 0.0  ;;  %v615_v0 = vadd.f32 3.0, %v295_v53  ;;  %v616_v1 = vadd.f32 3.0, %v296_v61  ;;  %v297_v2 = vld [vmem:[%s2411_s23 + $0x4e8] sm:$0xff]  ;;  %v1251_v3 = vmin.f32 %v931_v58, 6.0 }
  0xdd   : > { %1888 = vst [vmem:[%s2433_s16 + $0x4a0] sm:$0xff] %v1568_v55  ;;  %v1252_v4 = vmin.f32 %v932_v59, 6.0  ;;  %v1253_v5 = vmin.f32 %v933_v60, 6.0  ;;  %v617_v6 = vadd.f32 3.0, %v297_v2  ;;  %v298_v7 = vld [vmem:[%s2411_s23 + $0x4f0] sm:$0xff]  ;;  %v299_v20 = vld [vmem:[%s2411_s23 + $0x4f8] sm:$0xff] }
  0xde   : > { %1889 = vst [vmem:[%s2433_s16 + $0x4a8] sm:$0xff] %v1569_v57  ;;  %v1570_v8 = vmul.f32 0.16666667, %v1250_v62  ;;  %v1254_v9 = vmin.f32 %v934_v63, 6.0  ;;  %v935_v10 = vmax.f32 %v615_v0, 0.0  ;;  %v936_v11 = vmax.f32 %v616_v1, 0.0 }
  0xdf   : > { %v1571_v12 = vmul.f32 0.16666667, %v1251_v3  ;;  %v1572_v13 = vmul.f32 0.16666667, %v1252_v4  ;;  %v1573_v14 = vmul.f32 0.16666667, %v1253_v5 }
  0xe0   : > { %1890 = vst [vmem:[%s2433_s16 + $0x4b0] sm:$0xff] %v1570_v8  ;;  %v1574_v15 = vmul.f32 0.16666667, %v1254_v9  ;;  %v1255_v16 = vmin.f32 %v935_v10, 6.0  ;;  %v1256_v17 = vmin.f32 %v936_v11, 6.0  ;;  %v937_v18 = vmax.f32 %v617_v6, 0.0 }
  0xe1   : > { %1891 = vst [vmem:[%s2433_s16 + $0x4b8] sm:$0xff] %v1571_v12  ;;  %v618_v19 = vadd.f32 3.0, %v298_v7  ;;  %v300_v21 = vld [vmem:[%s2411_s23 + $0x500] sm:$0xff]  ;;  %v301_v22 = vld [vmem:[%s2411_s23 + $0x508] sm:$0xff]  ;;  %v619_v27 = vadd.f32 3.0, %v299_v20  ;;  %v302_v30 = vld [vmem:[%s2411_s23 + $0x510] sm:$0xff] }
  0xe2   : > { %1892 = vst [vmem:[%s2433_s16 + $0x4c0] sm:$0xff] %v1572_v13  ;;  %v1575_v23 = vmul.f32 0.16666667, %v1255_v16  ;;  %v1576_v24 = vmul.f32 0.16666667, %v1256_v17  ;;  %v1257_v25 = vmin.f32 %v937_v18, 6.0 }
  0xe3   : > { %1893 = vst [vmem:[%s2433_s16 + $0x4c8] sm:$0xff] %v1573_v14  ;;  %v938_v26 = vmax.f32 %v618_v19, 0.0  ;;  %v620_v28 = vadd.f32 3.0, %v300_v21  ;;  %v621_v29 = vadd.f32 3.0, %v301_v22  ;;  %v622_v32 = vadd.f32 3.0, %v302_v30  ;;  %v303_v33 = vld [vmem:[%s2411_s23 + $0x518] sm:$0xff] }
  0xe4   : > { %1894 = vst [vmem:[%s2433_s16 + $0x4d0] sm:$0xff] %v1574_v15  ;;  %v1577_v31 = vmul.f32 0.16666667, %v1257_v25  ;;  %v304_v34 = vld [vmem:[%s2411_s23 + $0x520] sm:$0xff]  ;;  %v939_v36 = vmax.f32 %v619_v27, 0.0  ;;  %v305_v39 = vld [vmem:[%s2411_s23 + $0x528] sm:$0xff] }
  0xe5   : > { %1895 = vst [vmem:[%s2433_s16 + $0x4d8] sm:$0xff] %v1575_v23  ;;  %v1258_v35 = vmin.f32 %v938_v26, 6.0  ;;  %v940_v37 = vmax.f32 %v620_v28, 0.0  ;;  %v941_v38 = vmax.f32 %v621_v29, 0.0  ;;  %v942_v40 = vmax.f32 %v622_v32, 0.0  ;;  %v306_v44 = vld [vmem:[%s2411_s23 + $0x530] sm:$0xff] }
  0xe6   : > { %1896 = vst [vmem:[%s2433_s16 + $0x4e0] sm:$0xff] %v1576_v24  ;;  %v623_v41 = vadd.f32 3.0, %v303_v33  ;;  %v624_v42 = vadd.f32 3.0, %v304_v34  ;;  %v625_v43 = vadd.f32 3.0, %v305_v39  ;;  %v1259_v46 = vmin.f32 %v939_v36, 6.0  ;;  %v307_v53 = vld [vmem:[%s2411_s23 + $0x538] sm:$0xff] }
  0xe7   : > { %1897 = vst [vmem:[%s2433_s16 + $0x4e8] sm:$0xff] %v1577_v31  ;;  %v1578_v45 = vmul.f32 0.16666667, %v1258_v35  ;;  %v1260_v47 = vmin.f32 %v940_v37, 6.0  ;;  %v1261_v48 = vmin.f32 %v941_v38, 6.0  ;;  %v1262_v49 = vmin.f32 %v942_v40, 6.0 }
  0xe8   : > { %v943_v50 = vmax.f32 %v623_v41, 0.0  ;;  %v944_v51 = vmax.f32 %v624_v42, 0.0  ;;  %v945_v52 = vmax.f32 %v625_v43, 0.0  ;;  %v308_v54 = vld [vmem:[%s2411_s23 + $0x540] sm:$0xff]  ;;  %v1579_v55 = vmul.f32 0.16666667, %v1259_v46 }
  0xe9   : > { %1898 = vst [vmem:[%s2433_s16 + $0x4f0] sm:$0xff] %v1578_v45  ;;  %v1580_v56 = vmul.f32 0.16666667, %v1260_v47  ;;  %v626_v57 = vadd.f32 3.0, %v306_v44  ;;  %v1581_v58 = vmul.f32 0.16666667, %v1261_v48 }
  0xea   : > { %v1582_v59 = vmul.f32 0.16666667, %v1262_v49  ;;  %v1263_v60 = vmin.f32 %v943_v50, 6.0  ;;  %v1264_v61 = vmin.f32 %v944_v51, 6.0  ;;  %1899 = vst [vmem:[%s2433_s16 + $0x4f8] sm:$0xff] %v1579_v55  ;;  %v1265_v62 = vmin.f32 %v945_v52, 6.0 }
  0xeb   : > { %v946_v63 = vmax.f32 %v626_v57, 0.0  ;;  %v627_v0 = vadd.f32 3.0, %v307_v53  ;;  %v628_v1 = vadd.f32 3.0, %v308_v54  ;;  %v309_v2 = vld [vmem:[%s2411_s23 + $0x548] sm:$0xff]  ;;  %1900 = vst [vmem:[%s2433_s16 + $0x500] sm:$0xff] %v1580_v56  ;;  %v310_v11 = vld [vmem:[%s2411_s23 + $0x550] sm:$0xff] }
  0xec   : > { %v1583_v3 = vmul.f32 0.16666667, %v1263_v60  ;;  %v1584_v4 = vmul.f32 0.16666667, %v1264_v61  ;;  %v629_v5 = vadd.f32 3.0, %v309_v2  ;;  %1901 = vst [vmem:[%s2433_s16 + $0x508] sm:$0xff] %v1581_v58 }
  0xed   : > { %v1585_v6 = vmul.f32 0.16666667, %v1265_v62  ;;  %v1266_v7 = vmin.f32 %v946_v63, 6.0  ;;  %v947_v8 = vmax.f32 %v627_v0, 0.0  ;;  %v948_v9 = vmax.f32 %v628_v1, 0.0  ;;  %1902 = vst [vmem:[%s2433_s16 + $0x510] sm:$0xff] %v1582_v59 }
  0xee   : > { %v949_v10 = vmax.f32 %v629_v5, 0.0  ;;  %v311_v12 = vld [vmem:[%s2411_s23 + $0x558] sm:$0xff]  ;;  %v312_v13 = vld [vmem:[%s2411_s23 + $0x560] sm:$0xff]  ;;  %1903 = vst [vmem:[%s2433_s16 + $0x518] sm:$0xff] %v1583_v3  ;;  %v630_v17 = vadd.f32 3.0, %v310_v11  ;;  %v313_v21 = vld [vmem:[%s2411_s23 + $0x568] sm:$0xff] }
  0xef   : > { %v1586_v14 = vmul.f32 0.16666667, %v1266_v7  ;;  %v1267_v15 = vmin.f32 %v947_v8, 6.0  ;;  %v1268_v16 = vmin.f32 %v948_v9, 6.0  ;;  %1904 = vst [vmem:[%s2433_s16 + $0x520] sm:$0xff] %v1584_v4  ;;  %v631_v19 = vadd.f32 3.0, %v311_v12 }
  0xf0   : > { %v1269_v18 = vmin.f32 %v949_v10, 6.0  ;;  %v632_v20 = vadd.f32 3.0, %v312_v13  ;;  %v314_v22 = vld [vmem:[%s2411_s23 + $0x570] sm:$0xff]  ;;  %1905 = vst [vmem:[%s2433_s16 + $0x528] sm:$0xff] %v1585_v6  ;;  %v950_v25 = vmax.f32 %v630_v17, 0.0  ;;  %v633_v29 = vadd.f32 3.0, %v313_v21 }
  0xf1   : > { %v1587_v23 = vmul.f32 0.16666667, %v1267_v15  ;;  %v1588_v24 = vmul.f32 0.16666667, %v1268_v16  ;;  %1906 = vst [vmem:[%s2433_s16 + $0x530] sm:$0xff] %v1586_v14  ;;  %v951_v27 = vmax.f32 %v631_v19, 0.0 }
  0xf2   : > { %v1589_v26 = vmul.f32 0.16666667, %v1269_v18  ;;  %v952_v28 = vmax.f32 %v632_v20, 0.0  ;;  %v1270_v30 = vmin.f32 %v950_v25, 6.0  ;;  %v634_v31 = vadd.f32 3.0, %v314_v22  ;;  %v315_v32 = vld [vmem:[%s2411_s23 + $0x578] sm:$0xff] }
  0xf3   : > { %1907 = vst [vmem:[%s2433_s16 + $0x538] sm:$0xff] %v1587_v23  ;;  %v316_v33 = vld [vmem:[%s2411_s23 + $0x580] sm:$0xff]  ;;  %v317_v34 = vld [vmem:[%s2411_s23 + $0x588] sm:$0xff]  ;;  %v1271_v35 = vmin.f32 %v951_v27, 6.0  ;;  %v953_v37 = vmax.f32 %v633_v29, 0.0  ;;  %v635_v38 = vadd.f32 3.0, %v315_v32 }
  0xf4   : > { %1908 = vst [vmem:[%s2433_s16 + $0x540] sm:$0xff] %v1588_v24  ;;  %v1272_v36 = vmin.f32 %v952_v28, 6.0  ;;  %v318_v39 = vld [vmem:[%s2411_s23 + $0x590] sm:$0xff]  ;;  %v1590_v40 = vmul.f32 0.16666667, %v1270_v30  ;;  %v954_v41 = vmax.f32 %v634_v31, 0.0 }
  0xf5   : > { %1909 = vst [vmem:[%s2433_s16 + $0x548] sm:$0xff] %v1589_v26  ;;  %v636_v42 = vadd.f32 3.0, %v316_v33  ;;  %v637_v43 = vadd.f32 3.0, %v317_v34  ;;  %v1591_v44 = vmul.f32 0.16666667, %v1271_v35  ;;  %v1273_v46 = vmin.f32 %v953_v37, 6.0 }
  0xf6   : > { %v1592_v45 = vmul.f32 0.16666667, %v1272_v36  ;;  %v955_v47 = vmax.f32 %v635_v38, 0.0  ;;  %1910 = vst [vmem:[%s2433_s16 + $0x550] sm:$0xff] %v1590_v40  ;;  %v1274_v48 = vmin.f32 %v954_v41, 6.0  ;;  %v638_v51 = vadd.f32 3.0, %v318_v39 }
  0xf7   : > { %v956_v49 = vmax.f32 %v636_v42, 0.0  ;;  %v957_v50 = vmax.f32 %v637_v43, 0.0  ;;  %v319_v52 = vld [vmem:[%s2411_s23 + $0x598] sm:$0xff]  ;;  %1911 = vst [vmem:[%s2433_s16 + $0x558] sm:$0xff] %v1591_v44  ;;  %v1593_v53 = vmul.f32 0.16666667, %v1273_v46 }
  0xf8   : > { %v1275_v54 = vmin.f32 %v955_v47, 6.0  ;;  %v639_v55 = vadd.f32 3.0, %v319_v52  ;;  %v320_v56 = vld [vmem:[%s2411_s23 + $0x5a0] sm:$0xff]  ;;  %1912 = vst [vmem:[%s2433_s16 + $0x560] sm:$0xff] %v1592_v45  ;;  %v1594_v57 = vmul.f32 0.16666667, %v1274_v48 }
  0xf9   : > { %v1276_v58 = vmin.f32 %v956_v49, 6.0  ;;  %v1277_v59 = vmin.f32 %v957_v50, 6.0  ;;  %v958_v60 = vmax.f32 %v638_v51, 0.0  ;;  %1913 = vst [vmem:[%s2433_s16 + $0x568] sm:$0xff] %v1593_v53  ;;  %v640_v63 = vadd.f32 3.0, %v320_v56  ;;  %v321_v0 = vld [vmem:[%s2411_s23 + $0x5a8] sm:$0xff] }
  0xfa   : > { %v1595_v61 = vmul.f32 0.16666667, %v1275_v54  ;;  %v959_v62 = vmax.f32 %v639_v55, 0.0  ;;  %1914 = vst [vmem:[%s2433_s16 + $0x570] sm:$0xff] %v1594_v57  ;;  %v641_v6 = vadd.f32 3.0, %v321_v0  ;;  %v322_v7 = vld [vmem:[%s2411_s23 + $0x5b0] sm:$0xff] }
  0xfb   : > { %v1596_v1 = vmul.f32 0.16666667, %v1276_v58  ;;  %v1597_v2 = vmul.f32 0.16666667, %v1277_v59  ;;  %v1278_v3 = vmin.f32 %v958_v60, 6.0  ;;  %v960_v5 = vmax.f32 %v640_v63, 0.0 }
  0xfc   : > { %1915 = vst [vmem:[%s2433_s16 + $0x578] sm:$0xff] %v1595_v61  ;;  %v1279_v4 = vmin.f32 %v959_v62, 6.0  ;;  %v323_v8 = vld [vmem:[%s2411_s23 + $0x5b8] sm:$0xff]  ;;  %v642_v10 = vadd.f32 3.0, %v322_v7  ;;  %v324_v12 = vld [vmem:[%s2411_s23 + $0x5c0] sm:$0xff]  ;;  %v961_v15 = vmax.f32 %v641_v6, 0.0 }
  0xfd   : > { %1916 = vst [vmem:[%s2433_s16 + $0x580] sm:$0xff] %v1596_v1  ;;  %v1598_v9 = vmul.f32 0.16666667, %v1278_v3  ;;  %v643_v11 = vadd.f32 3.0, %v323_v8  ;;  %v1280_v14 = vmin.f32 %v960_v5, 6.0  ;;  %v644_v16 = vadd.f32 3.0, %v324_v12 }
  0xfe   : > { %1917 = vst [vmem:[%s2433_s16 + $0x588] sm:$0xff] %v1597_v2  ;;  %v1599_v13 = vmul.f32 0.16666667, %v1279_v4  ;;  %v962_v17 = vmax.f32 %v642_v10, 0.0  ;;  %v325_v19 = vld [vmem:[%s2411_s23 + $0x5c8] sm:$0xff]  ;;  %v326_v20 = vld [vmem:[%s2411_s23 + $0x5d0] sm:$0xff] }
  0xff   : > { %1918 = vst [vmem:[%s2433_s16 + $0x590] sm:$0xff] %v1598_v9  ;;  %v963_v18 = vmax.f32 %v643_v11, 0.0  ;;  %v327_v21 = vld [vmem:[%s2411_s23 + $0x5d8] sm:$0xff]  ;;  %v1600_v22 = vmul.f32 0.16666667, %v1280_v14  ;;  %v1281_v23 = vmin.f32 %v961_v15, 6.0 }
 0x100   : > { %1919 = vst [vmem:[%s2433_s16 + $0x598] sm:$0xff] %v1599_v13  ;;  %v964_v24 = vmax.f32 %v644_v16, 0.0  ;;  %v645_v25 = vadd.f32 3.0, %v325_v19  ;;  %v1282_v26 = vmin.f32 %v962_v17, 6.0  ;;  %v646_v28 = vadd.f32 3.0, %v326_v20  ;;  %v328_v30 = vld [vmem:[%s2411_s23 + $0x5e0] sm:$0xff] }
 0x101   : > { %v1283_v27 = vmin.f32 %v963_v18, 6.0  ;;  %v647_v29 = vadd.f32 3.0, %v327_v21  ;;  %v329_v31 = vld [vmem:[%s2411_s23 + $0x5e8] sm:$0xff]  ;;  %1920 = vst [vmem:[%s2433_s16 + $0x5a0] sm:$0xff] %v1600_v22  ;;  %v1601_v32 = vmul.f32 0.16666667, %v1281_v23 }
 0x102   : > { %v1284_v33 = vmin.f32 %v964_v24, 6.0  ;;  %v965_v34 = vmax.f32 %v645_v25, 0.0  ;;  %v648_v35 = vadd.f32 3.0, %v328_v30  ;;  %v1602_v36 = vmul.f32 0.16666667, %v1282_v26  ;;  %v330_v46 = vld [vmem:[%s2411_s23 + $0x5f0] sm:$0xff] }
 0x103   : > { %v1603_v37 = vmul.f32 0.16666667, %v1283_v27  ;;  %v966_v38 = vmax.f32 %v646_v28, 0.0  ;;  %v967_v39 = vmax.f32 %v647_v29, 0.0  ;;  %1921 = vst [vmem:[%s2433_s16 + $0x5a8] sm:$0xff] %v1601_v32  ;;  %v649_v43 = vadd.f32 3.0, %v329_v31 }
 0x104   : > { %v1604_v40 = vmul.f32 0.16666667, %v1284_v33  ;;  %v1285_v41 = vmin.f32 %v965_v34, 6.0  ;;  %v968_v42 = vmax.f32 %v648_v35, 0.0  ;;  %1922 = vst [vmem:[%s2433_s16 + $0x5b0] sm:$0xff] %v1602_v36  ;;  %v331_v47 = vld [vmem:[%s2411_s23 + $0x5f8] sm:$0xff] }
 0x105   : > { %v1286_v44 = vmin.f32 %v966_v38, 6.0  ;;  %v1287_v45 = vmin.f32 %v967_v39, 6.0  ;;  %v332_v48 = vld [vmem:[%s2411_s23 + $0x600] sm:$0xff]  ;;  %1923 = vst [vmem:[%s2433_s16 + $0x5b8] sm:$0xff] %v1603_v37  ;;  %v969_v51 = vmax.f32 %v649_v43, 0.0  ;;  %v650_v52 = vadd.f32 3.0, %v330_v46 }
 0x106   : > { %v1605_v49 = vmul.f32 0.16666667, %v1285_v41  ;;  %v1288_v50 = vmin.f32 %v968_v42, 6.0  ;;  %1924 = vst [vmem:[%s2433_s16 + $0x5c0] sm:$0xff] %v1604_v40  ;;  %v651_v55 = vadd.f32 3.0, %v331_v47  ;;  %v652_v59 = vadd.f32 3.0, %v332_v48 }
 0x107   : > { %v1606_v53 = vmul.f32 0.16666667, %v1286_v44  ;;  %v1607_v54 = vmul.f32 0.16666667, %v1287_v45  ;;  %v1289_v57 = vmin.f32 %v969_v51, 6.0  ;;  %v970_v58 = vmax.f32 %v650_v52, 0.0 }
 0x108   : > { %1925 = vst [vmem:[%s2433_s16 + $0x5c8] sm:$0xff] %v1605_v49  ;;  %v1608_v56 = vmul.f32 0.16666667, %v1288_v50  ;;  %v971_v60 = vmax.f32 %v651_v55, 0.0  ;;  %v333_v61 = vld [vmem:[%s2411_s23 + $0x608] sm:$0xff]  ;;  %v334_v62 = vld [vmem:[%s2411_s23 + $0x610] sm:$0xff] }
 0x109   : > { %1926 = vst [vmem:[%s2433_s16 + $0x5d0] sm:$0xff] %v1606_v53  ;;  %v335_v63 = vld [vmem:[%s2411_s23 + $0x618] sm:$0xff]  ;;  %v1609_v0 = vmul.f32 0.16666667, %v1289_v57  ;;  %v1290_v1 = vmin.f32 %v970_v58, 6.0  ;;  %v972_v2 = vmax.f32 %v652_v59, 0.0 }
 0x10a   : > { %1927 = vst [vmem:[%s2433_s16 + $0x5d8] sm:$0xff] %v1607_v54  ;;  %v653_v3 = vadd.f32 3.0, %v333_v61  ;;  %v1291_v4 = vmin.f32 %v971_v60, 6.0  ;;  %v654_v5 = vadd.f32 3.0, %v334_v62  ;;  %v655_v6 = vadd.f32 3.0, %v335_v63  ;;  %v336_v7 = vld [vmem:[%s2411_s23 + $0x620] sm:$0xff] }
 0x10b   : > { %1928 = vst [vmem:[%s2433_s16 + $0x5e0] sm:$0xff] %v1608_v56  ;;  %v337_v8 = vld [vmem:[%s2411_s23 + $0x628] sm:$0xff]  ;;  %v1610_v9 = vmul.f32 0.16666667, %v1290_v1  ;;  %v1292_v10 = vmin.f32 %v972_v2, 6.0  ;;  %v656_v12 = vadd.f32 3.0, %v336_v7 }
 0x10c   : > { %1929 = vst [vmem:[%s2433_s16 + $0x5e8] sm:$0xff] %v1609_v0  ;;  %v973_v11 = vmax.f32 %v653_v3, 0.0  ;;  %v1611_v13 = vmul.f32 0.16666667, %v1291_v4  ;;  %v974_v14 = vmax.f32 %v654_v5, 0.0  ;;  %v975_v15 = vmax.f32 %v655_v6, 0.0 }
 0x10d   : > { %v657_v16 = vadd.f32 3.0, %v337_v8  ;;  %v338_v17 = vld [vmem:[%s2411_s23 + $0x630] sm:$0xff]  ;;  %1930 = vst [vmem:[%s2433_s16 + $0x5f0] sm:$0xff] %v1610_v9  ;;  %v1612_v18 = vmul.f32 0.16666667, %v1292_v10  ;;  %v976_v20 = vmax.f32 %v656_v12, 0.0 }
 0x10e   : > { %v1293_v19 = vmin.f32 %v973_v11, 6.0  ;;  %v658_v21 = vadd.f32 3.0, %v338_v17  ;;  %1931 = vst [vmem:[%s2433_s16 + $0x5f8] sm:$0xff] %v1611_v13  ;;  %v1294_v22 = vmin.f32 %v974_v14, 6.0  ;;  %v1295_v23 = vmin.f32 %v975_v15, 6.0  ;;  %v339_v25 = vld [vmem:[%s2411_s23 + $0x638] sm:$0xff] }
 0x10f   : > { %v977_v24 = vmax.f32 %v657_v16, 0.0  ;;  %v340_v26 = vld [vmem:[%s2411_s23 + $0x640] sm:$0xff]  ;;  %1932 = vst [vmem:[%s2433_s16 + $0x600] sm:$0xff] %v1612_v18  ;;  %v1296_v28 = vmin.f32 %v976_v20, 6.0  ;;  %v659_v30 = vadd.f32 3.0, %v339_v25  ;;  %v341_v38 = vld [vmem:[%s2411_s23 + $0x648] sm:$0xff] }
 0x110   : > { %v1613_v27 = vmul.f32 0.16666667, %v1293_v19  ;;  %v978_v29 = vmax.f32 %v658_v21, 0.0  ;;  %v1614_v31 = vmul.f32 0.16666667, %v1294_v22  ;;  %v660_v34 = vadd.f32 3.0, %v340_v26 }
 0x111   : > { %v1615_v32 = vmul.f32 0.16666667, %v1295_v23  ;;  %v1297_v33 = vmin.f32 %v977_v24, 6.0  ;;  %v1616_v35 = vmul.f32 0.16666667, %v1296_v28  ;;  %v979_v37 = vmax.f32 %v659_v30, 0.0 }
 0x112   : > { %1933 = vst [vmem:[%s2433_s16 + $0x608] sm:$0xff] %v1613_v27  ;;  %v1298_v36 = vmin.f32 %v978_v29, 6.0  ;;  %v980_v40 = vmax.f32 %v660_v34, 0.0  ;;  %v661_v41 = vadd.f32 3.0, %v341_v38  ;;  %v342_v42 = vld [vmem:[%s2411_s23 + $0x650] sm:$0xff]  ;;  %v343_v46 = vld [vmem:[%s2411_s23 + $0x658] sm:$0xff] }
 0x113   : > { %1934 = vst [vmem:[%s2433_s16 + $0x610] sm:$0xff] %v1614_v31  ;;  %v1617_v39 = vmul.f32 0.16666667, %v1297_v33  ;;  %v1299_v44 = vmin.f32 %v979_v37, 6.0  ;;  %v662_v45 = vadd.f32 3.0, %v342_v42  ;;  %v663_v49 = vadd.f32 3.0, %v343_v46 }
 0x114   : > { %1935 = vst [vmem:[%s2433_s16 + $0x618] sm:$0xff] %v1615_v32  ;;  %v1618_v43 = vmul.f32 0.16666667, %v1298_v36  ;;  %v1300_v47 = vmin.f32 %v980_v40, 6.0  ;;  %v981_v48 = vmax.f32 %v661_v41, 0.0  ;;  %v344_v50 = vld [vmem:[%s2411_s23 + $0x660] sm:$0xff] }
 0x115   : > { %1936 = vst [vmem:[%s2433_s16 + $0x620] sm:$0xff] %v1616_v35  ;;  %v345_v51 = vld [vmem:[%s2411_s23 + $0x668] sm:$0xff]  ;;  %v1619_v52 = vmul.f32 0.16666667, %v1299_v44  ;;  %v982_v53 = vmax.f32 %v662_v45, 0.0  ;;  %v664_v54 = vadd.f32 3.0, %v344_v50 }
 0x116   : > { %1937 = vst [vmem:[%s2433_s16 + $0x628] sm:$0xff] %v1617_v39  ;;  %v665_v55 = vadd.f32 3.0, %v345_v51  ;;  %v1620_v56 = vmul.f32 0.16666667, %v1300_v47  ;;  %v1301_v57 = vmin.f32 %v981_v48, 6.0  ;;  %v983_v58 = vmax.f32 %v663_v49, 0.0 }
 0x117   : > { %1938 = vst [vmem:[%s2433_s16 + $0x630] sm:$0xff] %v1618_v43  ;;  %v346_v59 = vld [vmem:[%s2411_s23 + $0x670] sm:$0xff]  ;;  %v1302_v60 = vmin.f32 %v982_v53, 6.0  ;;  %v984_v61 = vmax.f32 %v664_v54, 0.0  ;;  %v347_v0 = vld [vmem:[%s2411_s23 + $0x678] sm:$0xff]  ;;  %v348_v4 = vld [vmem:[%s2411_s23 + $0x680] sm:$0xff] }
 0x118   : > { %1939 = vst [vmem:[%s2433_s16 + $0x638] sm:$0xff] %v1619_v52  ;;  %v985_v62 = vmax.f32 %v665_v55, 0.0  ;;  %v666_v63 = vadd.f32 3.0, %v346_v59  ;;  %v1621_v1 = vmul.f32 0.16666667, %v1301_v57  ;;  %v1303_v2 = vmin.f32 %v983_v58, 6.0 }
 0x119   : > { %1940 = vst [vmem:[%s2433_s16 + $0x640] sm:$0xff] %v1620_v56  ;;  %v667_v3 = vadd.f32 3.0, %v347_v0  ;;  %v1622_v5 = vmul.f32 0.16666667, %v1302_v60  ;;  %v1304_v6 = vmin.f32 %v984_v61, 6.0  ;;  %v349_v9 = vld [vmem:[%s2411_s23 + $0x688] sm:$0xff] }
 0x11a   : > { %v1305_v7 = vmin.f32 %v985_v62, 6.0  ;;  %v986_v8 = vmax.f32 %v666_v63, 0.0  ;;  %1941 = vst [vmem:[%s2433_s16 + $0x648] sm:$0xff] %v1621_v1  ;;  %v1623_v10 = vmul.f32 0.16666667, %v1303_v2  ;;  %v668_v12 = vadd.f32 3.0, %v348_v4 }
 0x11b   : > { %v987_v11 = vmax.f32 %v667_v3, 0.0  ;;  %v669_v13 = vadd.f32 3.0, %v349_v9  ;;  %1942 = vst [vmem:[%s2433_s16 + $0x650] sm:$0xff] %v1622_v5  ;;  %v1624_v14 = vmul.f32 0.16666667, %v1304_v6  ;;  %v350_v20 = vld [vmem:[%s2411_s23 + $0x690] sm:$0xff] }
 0x11c   : > { %v1625_v15 = vmul.f32 0.16666667, %v1305_v7  ;;  %v1306_v16 = vmin.f32 %v986_v8, 6.0  ;;  %1943 = vst [vmem:[%s2433_s16 + $0x658] sm:$0xff] %v1623_v10  ;;  %v988_v18 = vmax.f32 %v668_v12, 0.0  ;;  %v351_v21 = vld [vmem:[%s2411_s23 + $0x698] sm:$0xff] }
 0x11d   : > { %v1307_v17 = vmin.f32 %v987_v11, 6.0  ;;  %v989_v19 = vmax.f32 %v669_v13, 0.0  ;;  %1944 = vst [vmem:[%s2433_s16 + $0x660] sm:$0xff] %v1624_v14  ;;  %v670_v23 = vadd.f32 3.0, %v350_v20  ;;  %v671_v24 = vadd.f32 3.0, %v351_v21  ;;  %v352_v25 = vld [vmem:[%s2411_s23 + $0x6a0] sm:$0xff] }
 0x11e   : > { %v1626_v22 = vmul.f32 0.16666667, %v1306_v16  ;;  %1945 = vst [vmem:[%s2433_s16 + $0x668] sm:$0xff] %v1625_v15  ;;  %v1308_v27 = vmin.f32 %v988_v18, 6.0  ;;  %v672_v29 = vadd.f32 3.0, %v352_v25  ;;  %v353_v32 = vld [vmem:[%s2411_s23 + $0x6a8] sm:$0xff] }
 0x11f   : > { %v1627_v26 = vmul.f32 0.16666667, %v1307_v17  ;;  %v1309_v28 = vmin.f32 %v989_v19, 6.0  ;;  %v990_v30 = vmax.f32 %v670_v23, 0.0  ;;  %v991_v31 = vmax.f32 %v671_v24, 0.0  ;;  %v354_v33 = vld [vmem:[%s2411_s23 + $0x6b0] sm:$0xff] }
 0x120   : > { %1946 = vst [vmem:[%s2433_s16 + $0x670] sm:$0xff] %v1626_v22  ;;  %v355_v34 = vld [vmem:[%s2411_s23 + $0x6b8] sm:$0xff]  ;;  %v1628_v35 = vmul.f32 0.16666667, %v1308_v27  ;;  %v992_v37 = vmax.f32 %v672_v29, 0.0  ;;  %v673_v40 = vadd.f32 3.0, %v353_v32 }
 0x121   : > { %1947 = vst [vmem:[%s2433_s16 + $0x678] sm:$0xff] %v1627_v26  ;;  %v1629_v36 = vmul.f32 0.16666667, %v1309_v28  ;;  %v1310_v38 = vmin.f32 %v990_v30, 6.0  ;;  %v1311_v39 = vmin.f32 %v991_v31, 6.0  ;;  %v674_v41 = vadd.f32 3.0, %v354_v33 }
 0x122   : > { %v356_v42 = vld [vmem:[%s2411_s23 + $0x6c0] sm:$0xff]  ;;  %v357_v43 = vld [vmem:[%s2411_s23 + $0x6c8] sm:$0xff]  ;;  %1948 = vst [vmem:[%s2433_s16 + $0x680] sm:$0xff] %v1628_v35  ;;  %v1312_v44 = vmin.f32 %v992_v37, 6.0  ;;  %v675_v45 = vadd.f32 3.0, %v355_v34  ;;  %v358_v48 = vld [vmem:[%s2411_s23 + $0x6d0] sm:$0xff] }
 0x123   : > { %v676_v46 = vadd.f32 3.0, %v356_v42  ;;  %v677_v47 = vadd.f32 3.0, %v357_v43  ;;  %1949 = vst [vmem:[%s2433_s16 + $0x688] sm:$0xff] %v1629_v36  ;;  %v1630_v49 = vmul.f32 0.16666667, %v1310_v38  ;;  %v993_v51 = vmax.f32 %v673_v40, 0.0 }
 0x124   : > { %v1631_v50 = vmul.f32 0.16666667, %v1311_v39  ;;  %v1632_v52 = vmul.f32 0.16666667, %v1312_v44  ;;  %v994_v53 = vmax.f32 %v674_v41, 0.0  ;;  %v995_v54 = vmax.f32 %v675_v45, 0.0 }
 0x125   : > { %v996_v55 = vmax.f32 %v676_v46, 0.0  ;;  %v359_v56 = vld [vmem:[%s2411_s23 + $0x6d8] sm:$0xff]  ;;  %1950 = vst [vmem:[%s2433_s16 + $0x690] sm:$0xff] %v1630_v49  ;;  %v1313_v57 = vmin.f32 %v993_v51, 6.0  ;;  %v997_v58 = vmax.f32 %v677_v47, 0.0  ;;  %v678_v59 = vadd.f32 3.0, %v358_v48 }
 0x126   : > { %v679_v60 = vadd.f32 3.0, %v359_v56  ;;  %v360_v61 = vld [vmem:[%s2411_s23 + $0x6e0] sm:$0xff]  ;;  %1951 = vst [vmem:[%s2433_s16 + $0x698] sm:$0xff] %v1631_v50  ;;  %v1314_v62 = vmin.f32 %v994_v53, 6.0  ;;  %v1315_v63 = vmin.f32 %v995_v54, 6.0  ;;  %v361_v2 = vld [vmem:[%s2411_s23 + $0x6e8] sm:$0xff] }
 0x127   : > { %v1316_v0 = vmin.f32 %v996_v55, 6.0  ;;  %v680_v1 = vadd.f32 3.0, %v360_v61  ;;  %1952 = vst [vmem:[%s2433_s16 + $0x6a0] sm:$0xff] %v1632_v52  ;;  %v1633_v3 = vmul.f32 0.16666667, %v1313_v57  ;;  %v1317_v4 = vmin.f32 %v997_v58, 6.0 }
 0x128   : > { %v998_v5 = vmax.f32 %v678_v59, 0.0  ;;  %v999_v6 = vmax.f32 %v679_v60, 0.0  ;;  %v1634_v7 = vmul.f32 0.16666667, %v1314_v62  ;;  %v1635_v8 = vmul.f32 0.16666667, %v1315_v63 }
 0x129   : > { %v1636_v9 = vmul.f32 0.16666667, %v1316_v0  ;;  %1953 = vst [vmem:[%s2433_s16 + $0x6a8] sm:$0xff] %v1633_v3  ;;  %v1637_v10 = vmul.f32 0.16666667, %v1317_v4  ;;  %v1000_v13 = vmax.f32 %v680_v1, 0.0 }
 0x12a   : > { %v1318_v11 = vmin.f32 %v998_v5, 6.0  ;;  %v1319_v12 = vmin.f32 %v999_v6, 6.0  ;;  %1954 = vst [vmem:[%s2433_s16 + $0x6b0] sm:$0xff] %v1634_v7  ;;  %v681_v14 = vadd.f32 3.0, %v361_v2  ;;  %v362_v15 = vld [vmem:[%s2411_s23 + $0x6f0] sm:$0xff]  ;;  %v363_v16 = vld [vmem:[%s2411_s23 + $0x6f8] sm:$0xff] }
 0x12b   : > { %v364_v17 = vld [vmem:[%s2411_s23 + $0x700] sm:$0xff]  ;;  %1955 = vst [vmem:[%s2433_s16 + $0x6b8] sm:$0xff] %v1635_v8  ;;  %v1320_v20 = vmin.f32 %v1000_v13, 6.0  ;;  %v682_v22 = vadd.f32 3.0, %v362_v15  ;;  %v683_v23 = vadd.f32 3.0, %v363_v16  ;;  %v365_v25 = vld [vmem:[%s2411_s23 + $0x708] sm:$0xff] }
 0x12c   : > { %v1638_v18 = vmul.f32 0.16666667, %v1318_v11  ;;  %v1639_v19 = vmul.f32 0.16666667, %v1319_v12  ;;  %1956 = vst [vmem:[%s2433_s16 + $0x6c0] sm:$0xff] %v1636_v9  ;;  %v1001_v21 = vmax.f32 %v681_v14, 0.0 }
 0x12d   : > { %v684_v24 = vadd.f32 3.0, %v364_v17  ;;  %1957 = vst [vmem:[%s2433_s16 + $0x6c8] sm:$0xff] %v1637_v10  ;;  %v1640_v26 = vmul.f32 0.16666667, %v1320_v20  ;;  %v685_v27 = vadd.f32 3.0, %v365_v25  ;;  %v366_v28 = vld [vmem:[%s2411_s23 + $0x710] sm:$0xff] }
 0x12e   : > { %v367_v29 = vld [vmem:[%s2411_s23 + $0x718] sm:$0xff]  ;;  %1958 = vst [vmem:[%s2433_s16 + $0x6d0] sm:$0xff] %v1638_v18  ;;  %v1321_v30 = vmin.f32 %v1001_v21, 6.0  ;;  %v1002_v31 = vmax.f32 %v682_v22, 0.0  ;;  %v1003_v32 = vmax.f32 %v683_v23, 0.0  ;;  %v368_v34 = vld [vmem:[%s2411_s23 + $0x720] sm:$0xff] }
 0x12f   : > { %v1004_v33 = vmax.f32 %v684_v24, 0.0  ;;  %1959 = vst [vmem:[%s2433_s16 + $0x6d8] sm:$0xff] %v1639_v19  ;;  %v1005_v35 = vmax.f32 %v685_v27, 0.0  ;;  %v686_v36 = vadd.f32 3.0, %v366_v28  ;;  %v687_v37 = vadd.f32 3.0, %v367_v29  ;;  %v369_v39 = vld [vmem:[%s2411_s23 + $0x728] sm:$0xff] }
 0x130   : > { %v688_v38 = vadd.f32 3.0, %v368_v34  ;;  %1960 = vst [vmem:[%s2433_s16 + $0x6e0] sm:$0xff] %v1640_v26  ;;  %v1641_v40 = vmul.f32 0.16666667, %v1321_v30  ;;  %v1322_v41 = vmin.f32 %v1002_v31, 6.0  ;;  %v1323_v42 = vmin.f32 %v1003_v32, 6.0 }
 0x131   : > { %v1324_v43 = vmin.f32 %v1004_v33, 6.0  ;;  %v1325_v44 = vmin.f32 %v1005_v35, 6.0  ;;  %v1006_v45 = vmax.f32 %v686_v36, 0.0  ;;  %v1007_v46 = vmax.f32 %v687_v37, 0.0  ;;  %v370_v48 = vld [vmem:[%s2411_s23 + $0x730] sm:$0xff]  ;;  %v371_v49 = vld [vmem:[%s2411_s23 + $0x738] sm:$0xff] }
 0x132   : > { %v1008_v47 = vmax.f32 %v688_v38, 0.0  ;;  %1961 = vst [vmem:[%s2433_s16 + $0x6e8] sm:$0xff] %v1641_v40  ;;  %v1642_v50 = vmul.f32 0.16666667, %v1322_v41  ;;  %v1643_v51 = vmul.f32 0.16666667, %v1323_v42 }
 0x133   : > { %v689_v52 = vadd.f32 3.0, %v369_v39  ;;  %v1644_v53 = vmul.f32 0.16666667, %v1324_v43  ;;  %v1645_v54 = vmul.f32 0.16666667, %v1325_v44  ;;  %v1326_v55 = vmin.f32 %v1006_v45, 6.0 }
 0x134   : > { %v1327_v56 = vmin.f32 %v1007_v46, 6.0  ;;  %1962 = vst [vmem:[%s2433_s16 + $0x6f0] sm:$0xff] %v1642_v50  ;;  %v1328_v57 = vmin.f32 %v1008_v47, 6.0  ;;  %v690_v59 = vadd.f32 3.0, %v370_v48  ;;  %v691_v60 = vadd.f32 3.0, %v371_v49  ;;  %v372_v61 = vld [vmem:[%s2411_s23 + $0x740] sm:$0xff] }
 0x135   : > { %v1009_v58 = vmax.f32 %v689_v52, 0.0  ;;  %1963 = vst [vmem:[%s2433_s16 + $0x6f8] sm:$0xff] %v1643_v51  ;;  %v1646_v62 = vmul.f32 0.16666667, %v1326_v55  ;;  %v692_v0 = vadd.f32 3.0, %v372_v61  ;;  %v373_v6 = vld [vmem:[%s2411_s23 + $0x748] sm:$0xff] }
 0x136   : > { %v1647_v63 = vmul.f32 0.16666667, %v1327_v56  ;;  %1964 = vst [vmem:[%s2433_s16 + $0x700] sm:$0xff] %v1644_v53  ;;  %v1648_v1 = vmul.f32 0.16666667, %v1328_v57  ;;  %v1010_v3 = vmax.f32 %v690_v59, 0.0 }
 0x137   : > { %v1329_v2 = vmin.f32 %v1009_v58, 6.0  ;;  %v1011_v4 = vmax.f32 %v691_v60, 0.0  ;;  %1965 = vst [vmem:[%s2433_s16 + $0x708] sm:$0xff] %v1645_v54  ;;  %v1012_v5 = vmax.f32 %v692_v0, 0.0  ;;  %v374_v7 = vld [vmem:[%s2411_s23 + $0x750] sm:$0xff]  ;;  %v375_v8 = vld [vmem:[%s2411_s23 + $0x758] sm:$0xff] }
 0x138   : > { %1966 = vst [vmem:[%s2433_s16 + $0x710] sm:$0xff] %v1646_v62  ;;  %v1330_v10 = vmin.f32 %v1010_v3, 6.0  ;;  %v693_v12 = vadd.f32 3.0, %v373_v6  ;;  %v694_v14 = vadd.f32 3.0, %v374_v7  ;;  %v695_v15 = vadd.f32 3.0, %v375_v8  ;;  %v376_v16 = vld [vmem:[%s2411_s23 + $0x760] sm:$0xff] }
 0x139   : > { %v1649_v9 = vmul.f32 0.16666667, %v1329_v2  ;;  %v1331_v11 = vmin.f32 %v1011_v4, 6.0  ;;  %1967 = vst [vmem:[%s2433_s16 + $0x718] sm:$0xff] %v1647_v63  ;;  %v1332_v13 = vmin.f32 %v1012_v5, 6.0  ;;  %v377_v17 = vld [vmem:[%s2411_s23 + $0x768] sm:$0xff] }
 0x13a   : > { %1968 = vst [vmem:[%s2433_s16 + $0x720] sm:$0xff] %v1648_v1  ;;  %v1650_v18 = vmul.f32 0.16666667, %v1330_v10  ;;  %v1013_v20 = vmax.f32 %v693_v12, 0.0  ;;  %v1014_v22 = vmax.f32 %v694_v14, 0.0  ;;  %v1015_v23 = vmax.f32 %v695_v15, 0.0 }
 0x13b   : > { %v1651_v19 = vmul.f32 0.16666667, %v1331_v11  ;;  %1969 = vst [vmem:[%s2433_s16 + $0x728] sm:$0xff] %v1649_v9  ;;  %v1652_v21 = vmul.f32 0.16666667, %v1332_v13  ;;  %v696_v24 = vadd.f32 3.0, %v376_v16 }
 0x13c   : > { %1970 = vst [vmem:[%s2433_s16 + $0x730] sm:$0xff] %v1650_v18  ;;  %v1333_v25 = vmin.f32 %v1013_v20, 6.0  ;;  %v697_v26 = vadd.f32 3.0, %v377_v17  ;;  %v378_v27 = vld [vmem:[%s2411_s23 + $0x770] sm:$0xff]  ;;  %v379_v28 = vld [vmem:[%s2411_s23 + $0x778] sm:$0xff]  ;;  %v380_v29 = vld [vmem:[%s2411_s23 + $0x780] sm:$0xff] }
 0x13d   : > { %1971 = vst [vmem:[%s2433_s16 + $0x738] sm:$0xff] %v1651_v19  ;;  %v1334_v30 = vmin.f32 %v1014_v22, 6.0  ;;  %v1335_v31 = vmin.f32 %v1015_v23, 6.0  ;;  %v1016_v32 = vmax.f32 %v696_v24, 0.0  ;;  %v698_v33 = vadd.f32 3.0, %v378_v27  ;;  %v381_v34 = vld [vmem:[%s2411_s23 + $0x788] sm:$0xff] }
 0x13e   : > { %1972 = vst [vmem:[%s2433_s16 + $0x740] sm:$0xff] %v1652_v21  ;;  %v1653_v35 = vmul.f32 0.16666667, %v1333_v25  ;;  %v1017_v36 = vmax.f32 %v697_v26, 0.0  ;;  %v699_v37 = vadd.f32 3.0, %v379_v28  ;;  %v700_v38 = vadd.f32 3.0, %v380_v29 }
 0x13f   : > { %v1654_v39 = vmul.f32 0.16666667, %v1334_v30  ;;  %v1655_v40 = vmul.f32 0.16666667, %v1335_v31  ;;  %v1336_v41 = vmin.f32 %v1016_v32, 6.0  ;;  %v1018_v42 = vmax.f32 %v698_v33, 0.0 }
 0x140   : > { %1973 = vst [vmem:[%s2433_s16 + $0x748] sm:$0xff] %v1653_v35  ;;  %v1337_v43 = vmin.f32 %v1017_v36, 6.0  ;;  %v1019_v44 = vmax.f32 %v699_v37, 0.0  ;;  %v1020_v45 = vmax.f32 %v700_v38, 0.0  ;;  %v701_v46 = vadd.f32 3.0, %v381_v34  ;;  %v382_v47 = vld [vmem:[%s2411_s23 + $0x790] sm:$0xff] }
 0x141   : > { %1974 = vst [vmem:[%s2433_s16 + $0x750] sm:$0xff] %v1654_v39  ;;  %v1656_v48 = vmul.f32 0.16666667, %v1336_v41  ;;  %v1338_v49 = vmin.f32 %v1018_v42, 6.0  ;;  %v702_v50 = vadd.f32 3.0, %v382_v47  ;;  %v383_v51 = vld [vmem:[%s2411_s23 + $0x798] sm:$0xff] }
 0x142   : > { %1975 = vst [vmem:[%s2433_s16 + $0x758] sm:$0xff] %v1655_v40  ;;  %v1657_v52 = vmul.f32 0.16666667, %v1337_v43  ;;  %v1339_v53 = vmin.f32 %v1019_v44, 6.0  ;;  %v1340_v54 = vmin.f32 %v1020_v45, 6.0  ;;  %v1021_v55 = vmax.f32 %v701_v46, 0.0 }
 0x143   : > { %1976 = vst [vmem:[%s2433_s16 + $0x760] sm:$0xff] %v1656_v48  ;;  %v1658_v56 = vmul.f32 0.16666667, %v1338_v49  ;;  %v1022_v57 = vmax.f32 %v702_v50, 0.0  ;;  %v703_v58 = vadd.f32 3.0, %v383_v51  ;;  %v384_v59 = vld [vmem:[%s2411_s23 + $0x7a0] sm:$0xff] }
 0x144   : > { %1977 = vst [vmem:[%s2433_s16 + $0x768] sm:$0xff] %v1657_v52  ;;  %v1659_v60 = vmul.f32 0.16666667, %v1339_v53  ;;  %v1660_v61 = vmul.f32 0.16666667, %v1340_v54  ;;  %v1341_v62 = vmin.f32 %v1021_v55, 6.0 }
 0x145   : > { %1978 = vst [vmem:[%s2433_s16 + $0x770] sm:$0xff] %v1658_v56  ;;  %v1342_v63 = vmin.f32 %v1022_v57, 6.0  ;;  %v1023_v0 = vmax.f32 %v703_v58, 0.0  ;;  %v704_v1 = vadd.f32 3.0, %v384_v59  ;;  %v385_v2 = vld [vmem:[%s2411_s23 + $0x7a8] sm:$0xff]  ;;  %v386_v3 = vld [vmem:[%s2411_s23 + $0x7b0] sm:$0xff] }
 0x146   : > { %1979 = vst [vmem:[%s2433_s16 + $0x778] sm:$0xff] %v1659_v60  ;;  %v1661_v4 = vmul.f32 0.16666667, %v1341_v62  ;;  %v705_v5 = vadd.f32 3.0, %v385_v2  ;;  %v706_v6 = vadd.f32 3.0, %v386_v3  ;;  %v387_v7 = vld [vmem:[%s2411_s23 + $0x7b8] sm:$0xff] }
 0x147   : > { %1980 = vst [vmem:[%s2433_s16 + $0x780] sm:$0xff] %v1660_v61  ;;  %v1662_v8 = vmul.f32 0.16666667, %v1342_v63  ;;  %v1343_v9 = vmin.f32 %v1023_v0, 6.0  ;;  %v1024_v10 = vmax.f32 %v704_v1, 0.0  ;;  %v707_v11 = vadd.f32 3.0, %v387_v7 }
 0x148   : > { %1981 = vst [vmem:[%s2433_s16 + $0x788] sm:$0xff] %v1661_v4  ;;  %v1025_v12 = vmax.f32 %v705_v5, 0.0  ;;  %v1026_v13 = vmax.f32 %v706_v6, 0.0  ;;  %v388_v14 = vld [vmem:[%s2411_s23 + $0x7c0] sm:$0xff]  ;;  %v389_v15 = vld [vmem:[%s2411_s23 + $0x7c8] sm:$0xff]  ;;  %v390_v16 = vld [vmem:[%s2411_s23 + $0x7d0] sm:$0xff] }
 0x149   : > { %1982 = vst [vmem:[%s2433_s16 + $0x790] sm:$0xff] %v1662_v8  ;;  %v1663_v17 = vmul.f32 0.16666667, %v1343_v9  ;;  %v1344_v18 = vmin.f32 %v1024_v10, 6.0  ;;  %v1027_v19 = vmax.f32 %v707_v11, 0.0  ;;  %v708_v20 = vadd.f32 3.0, %v388_v14 }
 0x14a   : > { %v1345_v21 = vmin.f32 %v1025_v12, 6.0  ;;  %v1346_v22 = vmin.f32 %v1026_v13, 6.0  ;;  %v709_v23 = vadd.f32 3.0, %v389_v15  ;;  %v710_v24 = vadd.f32 3.0, %v390_v16  ;;  %v391_v25 = vld [vmem:[%s2411_s23 + $0x7d8] sm:$0xff]  ;;  %v392_v26 = vld [vmem:[%s2411_s23 + $0x7e0] sm:$0xff] }
 0x14b   : > { %1983 = vst [vmem:[%s2433_s16 + $0x798] sm:$0xff] %v1663_v17  ;;  %v1664_v27 = vmul.f32 0.16666667, %v1344_v18  ;;  %v1347_v28 = vmin.f32 %v1027_v19, 6.0  ;;  %v1028_v29 = vmax.f32 %v708_v20, 0.0  ;;  %v711_v30 = vadd.f32 3.0, %v391_v25 }
 0x14c   : > { %v1665_v31 = vmul.f32 0.16666667, %v1345_v21  ;;  %v1666_v32 = vmul.f32 0.16666667, %v1346_v22  ;;  %v1029_v33 = vmax.f32 %v709_v23, 0.0  ;;  %v1030_v34 = vmax.f32 %v710_v24, 0.0 }
 0x14d   : > { %1984 = vst [vmem:[%s2433_s16 + $0x7a0] sm:$0xff] %v1664_v27  ;;  %v1667_v35 = vmul.f32 0.16666667, %v1347_v28  ;;  %v1348_v36 = vmin.f32 %v1028_v29, 6.0  ;;  %v1031_v37 = vmax.f32 %v711_v30, 0.0  ;;  %v712_v38 = vadd.f32 3.0, %v392_v26 }
 0x14e   : > { %1985 = vst [vmem:[%s2433_s16 + $0x7a8] sm:$0xff] %v1665_v31  ;;  %v1349_v39 = vmin.f32 %v1029_v33, 6.0  ;;  %v1350_v40 = vmin.f32 %v1030_v34, 6.0  ;;  %v393_v41 = vld [vmem:[%s2411_s23 + $0x7e8] sm:$0xff]  ;;  %v394_v42 = vld [vmem:[%s2411_s23 + $0x7f0] sm:$0xff]  ;;  %v395_v43 = vld [vmem:[%s2411_s23 + $0x7f8] sm:$0xff] }
 0x14f   : > { %1986 = vst [vmem:[%s2433_s16 + $0x7b0] sm:$0xff] %v1666_v32  ;;  %v1668_v44 = vmul.f32 0.16666667, %v1348_v36  ;;  %v1351_v45 = vmin.f32 %v1031_v37, 6.0  ;;  %v1032_v46 = vmax.f32 %v712_v38, 0.0  ;;  %v713_v47 = vadd.f32 3.0, %v393_v41 }
 0x150   : > { %1987 = vst [vmem:[%s2433_s16 + $0x7b8] sm:$0xff] %v1667_v35  ;;  %v1669_v48 = vmul.f32 0.16666667, %v1349_v39  ;;  %v1670_v49 = vmul.f32 0.16666667, %v1350_v40  ;;  %v714_v50 = vadd.f32 3.0, %v394_v42 }
 0x151   : > { %1988 = vst [vmem:[%s2433_s16 + $0x7c0] sm:$0xff] %v1668_v44  ;;  %v1671_v51 = vmul.f32 0.16666667, %v1351_v45  ;;  %v1352_v52 = vmin.f32 %v1032_v46, 6.0  ;;  %v1033_v53 = vmax.f32 %v713_v47, 0.0  ;;  %v715_v54 = vadd.f32 3.0, %v395_v43 }
 0x152   : > { %1989 = vst [vmem:[%s2433_s16 + $0x7c8] sm:$0xff] %v1669_v48  ;;  %v1034_v55 = vmax.f32 %v714_v50, 0.0  ;;  %v396_v56 = vld [vmem:[%s2411_s23 + $0x800] sm:$0xff]  ;;  %v397_v57 = vld [vmem:[%s2411_s23 + $0x808] sm:$0xff]  ;;  %v398_v58 = vld [vmem:[%s2411_s23 + $0x810] sm:$0xff]  ;;  %s2076_s10 = sshll.u32 %s2073_s27, 4  ;;  %s2077_s10 = int_to_ptr.hbm [resolvable:$true] %s2076_s10 }
 0x153   : > { %1990 = vst [vmem:[%s2433_s16 + $0x7d0] sm:$0xff] %v1670_v49  ;;  %v1672_v59 = vmul.f32 0.16666667, %v1352_v52  ;;  %v1353_v60 = vmin.f32 %v1033_v53, 6.0  ;;  %v1035_v61 = vmax.f32 %v715_v54, 0.0  ;;  %v716_v62 = vadd.f32 3.0, %v396_v56 }
 0x154   : > { %1991 = vst [vmem:[%s2433_s16 + $0x7d8] sm:$0xff] %v1671_v51  ;;  %v1354_v63 = vmin.f32 %v1034_v55, 6.0  ;;  %v717_v0 = vadd.f32 3.0, %v397_v57  ;;  %v718_v1 = vadd.f32 3.0, %v398_v58  ;;  %v399_v2 = vld [vmem:[%s2411_s23 + $0x818] sm:$0xff]  ;;  %v400_v3 = vld [vmem:[%s2411_s23 + $0x820] sm:$0xff] }
 0x155   : > { %1992 = vst [vmem:[%s2433_s16 + $0x7e0] sm:$0xff] %v1672_v59  ;;  %v1673_v4 = vmul.f32 0.16666667, %v1353_v60  ;;  %v1355_v5 = vmin.f32 %v1035_v61, 6.0  ;;  %v1036_v6 = vmax.f32 %v716_v62, 0.0  ;;  %v719_v7 = vadd.f32 3.0, %v399_v2 }
 0x156   : > { %v1674_v8 = vmul.f32 0.16666667, %v1354_v63  ;;  %v1037_v9 = vmax.f32 %v717_v0, 0.0  ;;  %v1038_v10 = vmax.f32 %v718_v1, 0.0  ;;  %v720_v11 = vadd.f32 3.0, %v400_v3  ;;  %v401_v12 = vld [vmem:[%s2411_s23 + $0x828] sm:$0xff] }
 0x157   : > { %1993 = vst [vmem:[%s2433_s16 + $0x7e8] sm:$0xff] %v1673_v4  ;;  %v1675_v13 = vmul.f32 0.16666667, %v1355_v5  ;;  %v1356_v14 = vmin.f32 %v1036_v6, 6.0  ;;  %v1039_v15 = vmax.f32 %v719_v7, 0.0  ;;  %v721_v16 = vadd.f32 3.0, %v401_v12 }
 0x158   : > { %1994 = vst [vmem:[%s2433_s16 + $0x7f0] sm:$0xff] %v1674_v8  ;;  %v1357_v17 = vmin.f32 %v1037_v9, 6.0  ;;  %v1358_v18 = vmin.f32 %v1038_v10, 6.0  ;;  %v1040_v19 = vmax.f32 %v720_v11, 0.0  ;;  %v402_v20 = vld [vmem:[%s2411_s23 + $0x830] sm:$0xff]  ;;  %v403_v21 = vld [vmem:[%s2411_s23 + $0x838] sm:$0xff] }
 0x159   : > { %1995 = vst [vmem:[%s2433_s16 + $0x7f8] sm:$0xff] %v1675_v13  ;;  %v1676_v22 = vmul.f32 0.16666667, %v1356_v14  ;;  %v1359_v23 = vmin.f32 %v1039_v15, 6.0  ;;  %v1041_v24 = vmax.f32 %v721_v16, 0.0  ;;  %v722_v25 = vadd.f32 3.0, %v402_v20 }
 0x15a   : > { %v1677_v26 = vmul.f32 0.16666667, %v1357_v17  ;;  %v1678_v27 = vmul.f32 0.16666667, %v1358_v18  ;;  %v1360_v28 = vmin.f32 %v1040_v19, 6.0  ;;  %v723_v29 = vadd.f32 3.0, %v403_v21 }
 0x15b   : > { %1996 = vst [vmem:[%s2433_s16 + $0x800] sm:$0xff] %v1676_v22  ;;  %v1679_v30 = vmul.f32 0.16666667, %v1359_v23  ;;  %v1361_v31 = vmin.f32 %v1041_v24, 6.0  ;;  %v1042_v32 = vmax.f32 %v722_v25, 0.0  ;;  %v404_v33 = vld [vmem:[%s2411_s23 + $0x840] sm:$0xff] }
 0x15c   : > { %1997 = vst [vmem:[%s2433_s16 + $0x808] sm:$0xff] %v1677_v26  ;;  %v1680_v34 = vmul.f32 0.16666667, %v1360_v28  ;;  %v1043_v35 = vmax.f32 %v723_v29, 0.0  ;;  %v724_v36 = vadd.f32 3.0, %v404_v33  ;;  %v405_v37 = vld [vmem:[%s2411_s23 + $0x848] sm:$0xff] }
 0x15d   : > { %1998 = vst [vmem:[%s2433_s16 + $0x810] sm:$0xff] %v1678_v27  ;;  %v1681_v38 = vmul.f32 0.16666667, %v1361_v31  ;;  %v1362_v39 = vmin.f32 %v1042_v32, 6.0  ;;  %v725_v40 = vadd.f32 3.0, %v405_v37  ;;  %v406_v41 = vld [vmem:[%s2411_s23 + $0x850] sm:$0xff] }
 0x15e   : > { %1999 = vst [vmem:[%s2433_s16 + $0x818] sm:$0xff] %v1679_v30  ;;  %v1363_v42 = vmin.f32 %v1043_v35, 6.0  ;;  %v1044_v43 = vmax.f32 %v724_v36, 0.0  ;;  %v726_v44 = vadd.f32 3.0, %v406_v41  ;;  %v407_v45 = vld [vmem:[%s2411_s23 + $0x858] sm:$0xff]  ;;  %v408_v46 = vld [vmem:[%s2411_s23 + $0x860] sm:$0xff] }
 0x15f   : > { %2000 = vst [vmem:[%s2433_s16 + $0x820] sm:$0xff] %v1680_v34  ;;  %v1682_v47 = vmul.f32 0.16666667, %v1362_v39  ;;  %v1045_v48 = vmax.f32 %v725_v40, 0.0  ;;  %v727_v49 = vadd.f32 3.0, %v407_v45  ;;  %v728_v50 = vadd.f32 3.0, %v408_v46 }
 0x160   : > { %2001 = vst [vmem:[%s2433_s16 + $0x828] sm:$0xff] %v1681_v38  ;;  %v1683_v51 = vmul.f32 0.16666667, %v1363_v42  ;;  %v1364_v52 = vmin.f32 %v1044_v43, 6.0  ;;  %v1046_v53 = vmax.f32 %v726_v44, 0.0  ;;  %v409_v54 = vld [vmem:[%s2411_s23 + $0x868] sm:$0xff] }
 0x161   : > { %2002 = vst [vmem:[%s2433_s16 + $0x830] sm:$0xff] %v1682_v47  ;;  %v1365_v55 = vmin.f32 %v1045_v48, 6.0  ;;  %v1047_v56 = vmax.f32 %v727_v49, 0.0  ;;  %v1048_v57 = vmax.f32 %v728_v50, 0.0  ;;  %v729_v58 = vadd.f32 3.0, %v409_v54  ;;  %v410_v59 = vld [vmem:[%s2411_s23 + $0x870] sm:$0xff] }
 0x162   : > { %2003 = vst [vmem:[%s2433_s16 + $0x838] sm:$0xff] %v1683_v51  ;;  %v1684_v60 = vmul.f32 0.16666667, %v1364_v52  ;;  %v1366_v61 = vmin.f32 %v1046_v53, 6.0  ;;  %v730_v62 = vadd.f32 3.0, %v410_v59  ;;  %v411_v63 = vld [vmem:[%s2411_s23 + $0x878] sm:$0xff] }
 0x163   : > { %v1685_v0 = vmul.f32 0.16666667, %v1365_v55  ;;  %v1367_v1 = vmin.f32 %v1047_v56, 6.0  ;;  %v1368_v2 = vmin.f32 %v1048_v57, 6.0  ;;  %v1049_v3 = vmax.f32 %v729_v58, 0.0  ;;  %v412_v4 = vld [vmem:[%s2411_s23 + $0x880] sm:$0xff] }
 0x164   : > { %2004 = vst [vmem:[%s2433_s16 + $0x840] sm:$0xff] %v1684_v60  ;;  %v1686_v5 = vmul.f32 0.16666667, %v1366_v61  ;;  %v1050_v6 = vmax.f32 %v730_v62, 0.0  ;;  %v731_v7 = vadd.f32 3.0, %v411_v63  ;;  %v732_v8 = vadd.f32 3.0, %v412_v4 }
 0x165   : > { %2005 = vst [vmem:[%s2433_s16 + $0x848] sm:$0xff] %v1685_v0  ;;  %v1687_v9 = vmul.f32 0.16666667, %v1367_v1  ;;  %v1688_v10 = vmul.f32 0.16666667, %v1368_v2  ;;  %v1369_v11 = vmin.f32 %v1049_v3, 6.0 }
 0x166   : > { %2006 = vst [vmem:[%s2433_s16 + $0x850] sm:$0xff] %v1686_v5  ;;  %v1370_v12 = vmin.f32 %v1050_v6, 6.0  ;;  %v1051_v13 = vmax.f32 %v731_v7, 0.0  ;;  %v1052_v14 = vmax.f32 %v732_v8, 0.0  ;;  %v413_v15 = vld [vmem:[%s2411_s23 + $0x888] sm:$0xff]  ;;  %v414_v16 = vld [vmem:[%s2411_s23 + $0x890] sm:$0xff] }
 0x167   : > { %2007 = vst [vmem:[%s2433_s16 + $0x858] sm:$0xff] %v1687_v9  ;;  %v1689_v17 = vmul.f32 0.16666667, %v1369_v11  ;;  %v733_v18 = vadd.f32 3.0, %v413_v15  ;;  %v734_v19 = vadd.f32 3.0, %v414_v16  ;;  %v415_v20 = vld [vmem:[%s2411_s23 + $0x898] sm:$0xff] }
 0x168   : > { %2008 = vst [vmem:[%s2433_s16 + $0x860] sm:$0xff] %v1688_v10  ;;  %v1690_v21 = vmul.f32 0.16666667, %v1370_v12  ;;  %v1371_v22 = vmin.f32 %v1051_v13, 6.0  ;;  %v1372_v23 = vmin.f32 %v1052_v14, 6.0  ;;  %v735_v24 = vadd.f32 3.0, %v415_v20 }
 0x169   : > { %2009 = vst [vmem:[%s2433_s16 + $0x868] sm:$0xff] %v1689_v17  ;;  %v1053_v25 = vmax.f32 %v733_v18, 0.0  ;;  %v1054_v26 = vmax.f32 %v734_v19, 0.0  ;;  %v416_v27 = vld [vmem:[%s2411_s23 + $0x8a0] sm:$0xff]  ;;  %v417_v28 = vld [vmem:[%s2411_s23 + $0x8a8] sm:$0xff]  ;;  %v418_v29 = vld [vmem:[%s2411_s23 + $0x8b0] sm:$0xff] }
 0x16a   : > { %2010 = vst [vmem:[%s2433_s16 + $0x870] sm:$0xff] %v1690_v21  ;;  %v1691_v30 = vmul.f32 0.16666667, %v1371_v22  ;;  %v1692_v31 = vmul.f32 0.16666667, %v1372_v23  ;;  %v1055_v32 = vmax.f32 %v735_v24, 0.0 }
 0x16b   : > { %v1373_v33 = vmin.f32 %v1053_v25, 6.0  ;;  %v1374_v34 = vmin.f32 %v1054_v26, 6.0  ;;  %v736_v35 = vadd.f32 3.0, %v416_v27  ;;  %v737_v36 = vadd.f32 3.0, %v417_v28  ;;  %v419_v37 = vld [vmem:[%s2411_s23 + $0x8b8] sm:$0xff]  ;;  %v420_v38 = vld [vmem:[%s2411_s23 + $0x8c0] sm:$0xff] }
 0x16c   : > { %2011 = vst [vmem:[%s2433_s16 + $0x878] sm:$0xff] %v1691_v30  ;;  %v1375_v39 = vmin.f32 %v1055_v32, 6.0  ;;  %v738_v40 = vadd.f32 3.0, %v418_v29  ;;  %v739_v41 = vadd.f32 3.0, %v419_v37  ;;  %v740_v42 = vadd.f32 3.0, %v420_v38  ;;  %v421_v43 = vld [vmem:[%s2411_s23 + $0x8c8] sm:$0xff] }
 0x16d   : > { %2012 = vst [vmem:[%s2433_s16 + $0x880] sm:$0xff] %v1692_v31  ;;  %v1693_v44 = vmul.f32 0.16666667, %v1373_v33  ;;  %v1694_v45 = vmul.f32 0.16666667, %v1374_v34  ;;  %v1056_v46 = vmax.f32 %v736_v35, 0.0 }
 0x16e   : > { %v1695_v47 = vmul.f32 0.16666667, %v1375_v39  ;;  %v1057_v48 = vmax.f32 %v737_v36, 0.0  ;;  %v1058_v49 = vmax.f32 %v738_v40, 0.0  ;;  %v1059_v50 = vmax.f32 %v739_v41, 0.0  ;;  %v422_v51 = vld [vmem:[%s2411_s23 + $0x8d0] sm:$0xff] }
 0x16f   : > { %2013 = vst [vmem:[%s2433_s16 + $0x888] sm:$0xff] %v1693_v44  ;;  %v1376_v52 = vmin.f32 %v1056_v46, 6.0  ;;  %v1060_v53 = vmax.f32 %v740_v42, 0.0  ;;  %v741_v54 = vadd.f32 3.0, %v421_v43  ;;  %v742_v55 = vadd.f32 3.0, %v422_v51  ;;  %v423_v56 = vld [vmem:[%s2411_s23 + $0x8d8] sm:$0xff] }
 0x170   : > { %2014 = vst [vmem:[%s2433_s16 + $0x890] sm:$0xff] %v1694_v45  ;;  %v1377_v57 = vmin.f32 %v1057_v48, 6.0  ;;  %v1378_v58 = vmin.f32 %v1058_v49, 6.0  ;;  %v1379_v59 = vmin.f32 %v1059_v50, 6.0  ;;  %v743_v60 = vadd.f32 3.0, %v423_v56  ;;  %v424_v61 = vld [vmem:[%s2411_s23 + $0x8e0] sm:$0xff] }
 0x171   : > { %2015 = vst [vmem:[%s2433_s16 + $0x898] sm:$0xff] %v1695_v47  ;;  %v1696_v62 = vmul.f32 0.16666667, %v1376_v52  ;;  %v1380_v63 = vmin.f32 %v1060_v53, 6.0  ;;  %v1061_v0 = vmax.f32 %v741_v54, 0.0  ;;  %v1062_v1 = vmax.f32 %v742_v55, 0.0 }
 0x172   : > { %v1697_v2 = vmul.f32 0.16666667, %v1377_v57  ;;  %v1698_v3 = vmul.f32 0.16666667, %v1378_v58  ;;  %v1699_v4 = vmul.f32 0.16666667, %v1379_v59 }
 0x173   : > { %2016 = vst [vmem:[%s2433_s16 + $0x8a0] sm:$0xff] %v1696_v62  ;;  %v1700_v5 = vmul.f32 0.16666667, %v1380_v63  ;;  %v1381_v6 = vmin.f32 %v1061_v0, 6.0  ;;  %v1382_v7 = vmin.f32 %v1062_v1, 6.0  ;;  %v1063_v8 = vmax.f32 %v743_v60, 0.0 }
 0x174   : > { %2017 = vst [vmem:[%s2433_s16 + $0x8a8] sm:$0xff] %v1697_v2  ;;  %v744_v9 = vadd.f32 3.0, %v424_v61  ;;  %v425_v10 = vld [vmem:[%s2411_s23 + $0x8e8] sm:$0xff]  ;;  %v426_v11 = vld [vmem:[%s2411_s23 + $0x8f0] sm:$0xff]  ;;  %v427_v12 = vld [vmem:[%s2411_s23 + $0x8f8] sm:$0xff]  ;;  %s2061_s29 = scalar_lea.sflag [#allocation4], %s2405_s20 }
 0x175   : > { %2018 = vst [vmem:[%s2433_s16 + $0x8b0] sm:$0xff] %v1698_v3  ;;  %v1701_v13 = vmul.f32 0.16666667, %v1381_v6  ;;  %v1702_v14 = vmul.f32 0.16666667, %v1382_v7  ;;  %v1383_v15 = vmin.f32 %v1063_v8, 6.0 }
 0x176   : > { %2019 = vst [vmem:[%s2433_s16 + $0x8b8] sm:$0xff] %v1699_v4  ;;  %v1064_v16 = vmax.f32 %v744_v9, 0.0  ;;  %v745_v17 = vadd.f32 3.0, %v425_v10  ;;  %v746_v18 = vadd.f32 3.0, %v426_v11  ;;  %v747_v19 = vadd.f32 3.0, %v427_v12  ;;  %v428_v20 = vld [vmem:[%s2411_s23 + $0x900] sm:$0xff] }
 0x177   : > { %2020 = vst [vmem:[%s2433_s16 + $0x8c0] sm:$0xff] %v1700_v5  ;;  %v1703_v21 = vmul.f32 0.16666667, %v1383_v15  ;;  %v748_v22 = vadd.f32 3.0, %v428_v20  ;;  %v429_v23 = vld [vmem:[%s2411_s23 + $0x908] sm:$0xff]  ;;  %v430_v24 = vld [vmem:[%s2411_s23 + $0x910] sm:$0xff] }
 0x178   : > { %2021 = vst [vmem:[%s2433_s16 + $0x8c8] sm:$0xff] %v1701_v13  ;;  %v1384_v25 = vmin.f32 %v1064_v16, 6.0  ;;  %v1065_v26 = vmax.f32 %v745_v17, 0.0  ;;  %v1066_v27 = vmax.f32 %v746_v18, 0.0  ;;  %v1067_v28 = vmax.f32 %v747_v19, 0.0  ;;  %v431_v29 = vld [vmem:[%s2411_s23 + $0x918] sm:$0xff] }
 0x179   : > { %2022 = vst [vmem:[%s2433_s16 + $0x8d0] sm:$0xff] %v1702_v14  ;;  %v1068_v30 = vmax.f32 %v748_v22, 0.0  ;;  %v749_v31 = vadd.f32 3.0, %v429_v23  ;;  %v750_v32 = vadd.f32 3.0, %v430_v24  ;;  %v751_v33 = vadd.f32 3.0, %v431_v29  ;;  %v432_v34 = vld [vmem:[%s2411_s23 + $0x920] sm:$0xff] }
 0x17a   : > { %2023 = vst [vmem:[%s2433_s16 + $0x8d8] sm:$0xff] %v1703_v21  ;;  %v1704_v35 = vmul.f32 0.16666667, %v1384_v25  ;;  %v1385_v36 = vmin.f32 %v1065_v26, 6.0  ;;  %v1386_v37 = vmin.f32 %v1066_v27, 6.0  ;;  %v1387_v38 = vmin.f32 %v1067_v28, 6.0 }
 0x17b   : > { %v1388_v39 = vmin.f32 %v1068_v30, 6.0  ;;  %v1069_v40 = vmax.f32 %v749_v31, 0.0  ;;  %v1070_v41 = vmax.f32 %v750_v32, 0.0  ;;  %v1071_v42 = vmax.f32 %v751_v33, 0.0  ;;  %v433_v43 = vld [vmem:[%s2411_s23 + $0x928] sm:$0xff]  ;;  %v434_v44 = vld [vmem:[%s2411_s23 + $0x930] sm:$0xff] }
 0x17c   : > { %2024 = vst [vmem:[%s2433_s16 + $0x8e0] sm:$0xff] %v1704_v35  ;;  %v1705_v45 = vmul.f32 0.16666667, %v1385_v36  ;;  %v1706_v46 = vmul.f32 0.16666667, %v1386_v37  ;;  %v752_v47 = vadd.f32 3.0, %v432_v34 }
 0x17d   : > { %v1707_v48 = vmul.f32 0.16666667, %v1387_v38  ;;  %v1708_v49 = vmul.f32 0.16666667, %v1388_v39  ;;  %v1389_v50 = vmin.f32 %v1069_v40, 6.0  ;;  %v1390_v51 = vmin.f32 %v1070_v41, 6.0 }
 0x17e   : > { %2025 = vst [vmem:[%s2433_s16 + $0x8e8] sm:$0xff] %v1705_v45  ;;  %v1391_v52 = vmin.f32 %v1071_v42, 6.0  ;;  %v1072_v53 = vmax.f32 %v752_v47, 0.0  ;;  %v753_v54 = vadd.f32 3.0, %v433_v43  ;;  %v754_v55 = vadd.f32 3.0, %v434_v44  ;;  %v435_v56 = vld [vmem:[%s2411_s23 + $0x938] sm:$0xff] }
 0x17f   : > { %2026 = vst [vmem:[%s2433_s16 + $0x8f0] sm:$0xff] %v1706_v46  ;;  %v1709_v57 = vmul.f32 0.16666667, %v1389_v50  ;;  %v1710_v58 = vmul.f32 0.16666667, %v1390_v51  ;;  %v755_v59 = vadd.f32 3.0, %v435_v56 }
 0x180   : > { %2027 = vst [vmem:[%s2433_s16 + $0x8f8] sm:$0xff] %v1707_v48  ;;  %v1711_v60 = vmul.f32 0.16666667, %v1391_v52  ;;  %v1392_v61 = vmin.f32 %v1072_v53, 6.0  ;;  %v1073_v62 = vmax.f32 %v753_v54, 0.0  ;;  %v1074_v63 = vmax.f32 %v754_v55, 0.0 }
 0x181   : > { %2028 = vst [vmem:[%s2433_s16 + $0x900] sm:$0xff] %v1708_v49  ;;  %v1075_v0 = vmax.f32 %v755_v59, 0.0  ;;  %v436_v1 = vld [vmem:[%s2411_s23 + $0x940] sm:$0xff]  ;;  %v437_v2 = vld [vmem:[%s2411_s23 + $0x948] sm:$0xff]  ;;  %v438_v3 = vld [vmem:[%s2411_s23 + $0x950] sm:$0xff]  ;;  %s2262_s30 = sshra.s32 %s2077_s10, 4  ;;  %s2263_s30 = int_to_ptr.hbm [resolvable:$true] %s2262_s30 }
 0x182   : > { %2029 = vst [vmem:[%s2433_s16 + $0x908] sm:$0xff] %v1709_v57  ;;  %v1712_v4 = vmul.f32 0.16666667, %v1392_v61  ;;  %v1393_v5 = vmin.f32 %v1073_v62, 6.0  ;;  %v1394_v6 = vmin.f32 %v1074_v63, 6.0  ;;  %v756_v7 = vadd.f32 3.0, %v436_v1  ;;  %p2269_p1 = scmp.lt.s32.totalorder %s2263_s30, %s3097_s1 }
 0x183   : > { %2030 = vst [vmem:[%s2433_s16 + $0x910] sm:$0xff] %v1710_v58  ;;  %v1395_v8 = vmin.f32 %v1075_v0, 6.0  ;;  %v757_v9 = vadd.f32 3.0, %v437_v2  ;;  %v758_v10 = vadd.f32 3.0, %v438_v3  ;;  %v439_v11 = vld [vmem:[%s2411_s23 + $0x958] sm:$0xff]  ;;  %v440_v12 = vld [vmem:[%s2411_s23 + $0x960] sm:$0xff] }
 0x184   : > { %2031 = vst [vmem:[%s2433_s16 + $0x918] sm:$0xff] %v1711_v60  ;;  %v1713_v13 = vmul.f32 0.16666667, %v1393_v5  ;;  %v1714_v14 = vmul.f32 0.16666667, %v1394_v6  ;;  %v1076_v15 = vmax.f32 %v756_v7, 0.0 }
 0x185   : > { %2032 = vst [vmem:[%s2433_s16 + $0x920] sm:$0xff] %v1712_v4  ;;  %v1715_v16 = vmul.f32 0.16666667, %v1395_v8  ;;  %v1077_v17 = vmax.f32 %v757_v9, 0.0  ;;  %v1078_v18 = vmax.f32 %v758_v10, 0.0  ;;  %v759_v19 = vadd.f32 3.0, %v439_v11 }
 0x186   : > { %2033 = vst [vmem:[%s2433_s16 + $0x928] sm:$0xff] %v1713_v13  ;;  %v1396_v20 = vmin.f32 %v1076_v15, 6.0  ;;  %v760_v21 = vadd.f32 3.0, %v440_v12  ;;  %v441_v22 = vld [vmem:[%s2411_s23 + $0x968] sm:$0xff]  ;;  %v442_v23 = vld [vmem:[%s2411_s23 + $0x970] sm:$0xff]  ;;  %v443_v24 = vld [vmem:[%s2411_s23 + $0x978] sm:$0xff] }
 0x187   : > { %2034 = vst [vmem:[%s2433_s16 + $0x930] sm:$0xff] %v1714_v14  ;;  %v1397_v25 = vmin.f32 %v1077_v17, 6.0  ;;  %v1398_v26 = vmin.f32 %v1078_v18, 6.0  ;;  %v1079_v27 = vmax.f32 %v759_v19, 0.0  ;;  %v761_v28 = vadd.f32 3.0, %v441_v22  ;;  %v444_v29 = vld [vmem:[%s2411_s23 + $0x980] sm:$0xff] }
 0x188   : > { %2035 = vst [vmem:[%s2433_s16 + $0x938] sm:$0xff] %v1715_v16  ;;  %v1716_v30 = vmul.f32 0.16666667, %v1396_v20  ;;  %v1080_v31 = vmax.f32 %v760_v21, 0.0  ;;  %v762_v32 = vadd.f32 3.0, %v442_v23  ;;  %v763_v33 = vadd.f32 3.0, %v443_v24 }
 0x189   : > { %v1717_v34 = vmul.f32 0.16666667, %v1397_v25  ;;  %v1718_v35 = vmul.f32 0.16666667, %v1398_v26  ;;  %v1399_v36 = vmin.f32 %v1079_v27, 6.0  ;;  %v1081_v37 = vmax.f32 %v761_v28, 0.0 }
 0x18a   : > { %2036 = vst [vmem:[%s2433_s16 + $0x940] sm:$0xff] %v1716_v30  ;;  %v1400_v38 = vmin.f32 %v1080_v31, 6.0  ;;  %v1082_v39 = vmax.f32 %v762_v32, 0.0  ;;  %v1083_v40 = vmax.f32 %v763_v33, 0.0  ;;  %v764_v41 = vadd.f32 3.0, %v444_v29  ;;  %v445_v42 = vld [vmem:[%s2411_s23 + $0x988] sm:$0xff] }
 0x18b   : > { %2037 = vst [vmem:[%s2433_s16 + $0x948] sm:$0xff] %v1717_v34  ;;  %v1719_v43 = vmul.f32 0.16666667, %v1399_v36  ;;  %v1401_v44 = vmin.f32 %v1081_v37, 6.0  ;;  %v765_v45 = vadd.f32 3.0, %v445_v42  ;;  %v446_v46 = vld [vmem:[%s2411_s23 + $0x990] sm:$0xff] }
 0x18c   : > { %2038 = vst [vmem:[%s2433_s16 + $0x950] sm:$0xff] %v1718_v35  ;;  %v1720_v47 = vmul.f32 0.16666667, %v1400_v38  ;;  %v1402_v48 = vmin.f32 %v1082_v39, 6.0  ;;  %v1403_v49 = vmin.f32 %v1083_v40, 6.0  ;;  %v1084_v50 = vmax.f32 %v764_v41, 0.0 }
 0x18d   : > { %2039 = vst [vmem:[%s2433_s16 + $0x958] sm:$0xff] %v1719_v43  ;;  %v1721_v51 = vmul.f32 0.16666667, %v1401_v44  ;;  %v1085_v52 = vmax.f32 %v765_v45, 0.0  ;;  %v766_v53 = vadd.f32 3.0, %v446_v46  ;;  %v447_v54 = vld [vmem:[%s2411_s23 + $0x998] sm:$0xff] }
 0x18e   : > { %2040 = vst [vmem:[%s2433_s16 + $0x960] sm:$0xff] %v1720_v47  ;;  %v1722_v55 = vmul.f32 0.16666667, %v1402_v48  ;;  %v1723_v56 = vmul.f32 0.16666667, %v1403_v49  ;;  %v1404_v57 = vmin.f32 %v1084_v50, 6.0 }
 0x18f   : > { %2041 = vst [vmem:[%s2433_s16 + $0x968] sm:$0xff] %v1721_v51  ;;  %v1405_v58 = vmin.f32 %v1085_v52, 6.0  ;;  %v1086_v59 = vmax.f32 %v766_v53, 0.0  ;;  %v767_v60 = vadd.f32 3.0, %v447_v54  ;;  %v448_v61 = vld [vmem:[%s2411_s23 + $0x9a0] sm:$0xff]  ;;  %v449_v62 = vld [vmem:[%s2411_s23 + $0x9a8] sm:$0xff] }
 0x190   : > { %2042 = vst [vmem:[%s2433_s16 + $0x970] sm:$0xff] %v1722_v55  ;;  %v1724_v63 = vmul.f32 0.16666667, %v1404_v57  ;;  %v768_v0 = vadd.f32 3.0, %v448_v61  ;;  %v769_v1 = vadd.f32 3.0, %v449_v62  ;;  %v450_v2 = vld [vmem:[%s2411_s23 + $0x9b0] sm:$0xff] }
 0x191   : > { %2043 = vst [vmem:[%s2433_s16 + $0x978] sm:$0xff] %v1723_v56  ;;  %v1725_v3 = vmul.f32 0.16666667, %v1405_v58  ;;  %v1406_v4 = vmin.f32 %v1086_v59, 6.0  ;;  %v1087_v5 = vmax.f32 %v767_v60, 0.0  ;;  %v770_v6 = vadd.f32 3.0, %v450_v2 }
 0x192   : > { %2044 = vst [vmem:[%s2433_s16 + $0x980] sm:$0xff] %v1724_v63  ;;  %v1088_v7 = vmax.f32 %v768_v0, 0.0  ;;  %v1089_v8 = vmax.f32 %v769_v1, 0.0  ;;  %v451_v9 = vld [vmem:[%s2411_s23 + $0x9b8] sm:$0xff]  ;;  %v452_v10 = vld [vmem:[%s2411_s23 + $0x9c0] sm:$0xff]  ;;  %v453_v11 = vld [vmem:[%s2411_s23 + $0x9c8] sm:$0xff] }
 0x193   : > { %2045 = vst [vmem:[%s2433_s16 + $0x988] sm:$0xff] %v1725_v3  ;;  %v1726_v12 = vmul.f32 0.16666667, %v1406_v4  ;;  %v1407_v13 = vmin.f32 %v1087_v5, 6.0  ;;  %v1090_v14 = vmax.f32 %v770_v6, 0.0  ;;  %v771_v15 = vadd.f32 3.0, %v451_v9 }
 0x194   : > { %v1408_v16 = vmin.f32 %v1088_v7, 6.0  ;;  %v1409_v17 = vmin.f32 %v1089_v8, 6.0  ;;  %v772_v18 = vadd.f32 3.0, %v452_v10  ;;  %v773_v19 = vadd.f32 3.0, %v453_v11  ;;  %v454_v20 = vld [vmem:[%s2411_s23 + $0x9d0] sm:$0xff]  ;;  %v455_v21 = vld [vmem:[%s2411_s23 + $0x9d8] sm:$0xff] }
 0x195   : > { %2046 = vst [vmem:[%s2433_s16 + $0x990] sm:$0xff] %v1726_v12  ;;  %v1727_v22 = vmul.f32 0.16666667, %v1407_v13  ;;  %v1410_v23 = vmin.f32 %v1090_v14, 6.0  ;;  %v1091_v24 = vmax.f32 %v771_v15, 0.0  ;;  %v774_v25 = vadd.f32 3.0, %v454_v20 }
 0x196   : > { %v1728_v26 = vmul.f32 0.16666667, %v1408_v16  ;;  %v1729_v27 = vmul.f32 0.16666667, %v1409_v17  ;;  %v1092_v28 = vmax.f32 %v772_v18, 0.0  ;;  %v1093_v29 = vmax.f32 %v773_v19, 0.0 }
 0x197   : > { %2047 = vst [vmem:[%s2433_s16 + $0x998] sm:$0xff] %v1727_v22  ;;  %v1730_v30 = vmul.f32 0.16666667, %v1410_v23  ;;  %v1411_v31 = vmin.f32 %v1091_v24, 6.0  ;;  %v1094_v32 = vmax.f32 %v774_v25, 0.0  ;;  %v775_v33 = vadd.f32 3.0, %v455_v21 }
 0x198   : > { %2048 = vst [vmem:[%s2433_s16 + $0x9a0] sm:$0xff] %v1728_v26  ;;  %v1412_v34 = vmin.f32 %v1092_v28, 6.0  ;;  %v1413_v35 = vmin.f32 %v1093_v29, 6.0  ;;  %v456_v36 = vld [vmem:[%s2411_s23 + $0x9e0] sm:$0xff]  ;;  %v457_v37 = vld [vmem:[%s2411_s23 + $0x9e8] sm:$0xff]  ;;  %v458_v38 = vld [vmem:[%s2411_s23 + $0x9f0] sm:$0xff] }
 0x199   : > { %2049 = vst [vmem:[%s2433_s16 + $0x9a8] sm:$0xff] %v1729_v27  ;;  %v1731_v39 = vmul.f32 0.16666667, %v1411_v31  ;;  %v1414_v40 = vmin.f32 %v1094_v32, 6.0  ;;  %v1095_v41 = vmax.f32 %v775_v33, 0.0  ;;  %v776_v42 = vadd.f32 3.0, %v456_v36 }
 0x19a   : > { %2050 = vst [vmem:[%s2433_s16 + $0x9b0] sm:$0xff] %v1730_v30  ;;  %v1732_v43 = vmul.f32 0.16666667, %v1412_v34  ;;  %v1733_v44 = vmul.f32 0.16666667, %v1413_v35  ;;  %v777_v45 = vadd.f32 3.0, %v457_v37 }
 0x19b   : > { %2051 = vst [vmem:[%s2433_s16 + $0x9b8] sm:$0xff] %v1731_v39  ;;  %v1734_v46 = vmul.f32 0.16666667, %v1414_v40  ;;  %v1415_v47 = vmin.f32 %v1095_v41, 6.0  ;;  %v1096_v48 = vmax.f32 %v776_v42, 0.0  ;;  %v778_v49 = vadd.f32 3.0, %v458_v38 }
 0x19c   : > { %2052 = vst [vmem:[%s2433_s16 + $0x9c0] sm:$0xff] %v1732_v43  ;;  %v1097_v50 = vmax.f32 %v777_v45, 0.0  ;;  %v459_v51 = vld [vmem:[%s2411_s23 + $0x9f8] sm:$0xff]  ;;  %s2264_s2 = scalar_lea.hbm %s2263_s30, 2560  ;;  %s2268_s5 = scalar_lea.hbm %s3097_s1, 12800 }
 0x19d   : > { %2053 = vst [vmem:[%s2433_s16 + $0x9c8] sm:$0xff] %v1733_v44  ;;  %v1735_v52 = vmul.f32 0.16666667, %v1415_v47  ;;  %v1416_v53 = vmin.f32 %v1096_v48, 6.0  ;;  %v1098_v54 = vmax.f32 %v778_v49, 0.0  ;;  %v779_v55 = vadd.f32 3.0, %v459_v51  ;;  %p2265_p6 = scmp.ne.s32.totalorder %s2263_s30, %s2264_s2  ;;  %p2270_p2 = scmp.lt.s32.totalorder %s2268_s5, %s2264_s2 }
 0x19e   : > { %2054 = vst [vmem:[%s2433_s16 + $0x9d0] sm:$0xff] %v1734_v46  ;;  %v1417_v56 = vmin.f32 %v1097_v50, 6.0 }
 0x19f   : > { %2055 = vst [vmem:[%s2433_s16 + $0x9d8] sm:$0xff] %v1735_v52  ;;  %v1736_v57 = vmul.f32 0.16666667, %v1416_v53  ;;  %v1418_v58 = vmin.f32 %v1098_v54, 6.0  ;;  %v1099_v59 = vmax.f32 %v779_v55, 0.0  ;;  %p2266_p12 = pnand %p2265_p6, %p2375_p10  ;;  %p2271_p3 = por %p2270_p2, %p2269_p1 }
 0x1a0   : > { %v1737_v60 = vmul.f32 0.16666667, %v1417_v56 }
 0x1a1   : > { %2056 = vst [vmem:[%s2433_s16 + $0x9e0] sm:$0xff] %v1736_v57  ;;  %v1738_v61 = vmul.f32 0.16666667, %v1418_v58  ;;  %v1419_v62 = vmin.f32 %v1099_v59, 6.0  ;;  %p2267_p0 = pneg %p2266_p12 }
 0x1a2   : > { %2057 = vst [vmem:[%s2433_s16 + $0x9e8] sm:$0xff] %v1737_v60 }
 0x1a3   : > { %2058 = vst [vmem:[%s2433_s16 + $0x9f0] sm:$0xff] %v1738_v61  ;;  %v1739_v63 = vmul.f32 0.16666667, %v1419_v62  ;;  %p2272_p4 = pnand %p2271_p3, %p2267_p0 }
 0x1a5   : > { %2059 = vst [vmem:[%s2433_s16 + $0x9f8] sm:$0xff] %v1739_v63 }
 0x1a6   : > { %2275 = shalt.err (!%p2272_p4)
}
 0x1a7   : > { %s2318_s14 = smov 4096   ;;  %s2319_s19 = smov 256  }
 0x1a8   : > { %2170 = dma.vmem_to_hbm [thread:$0]  (%p2375_p10), %s2075_s28, 40960, %s2077_s10, %s2061_s29, %s2318_s14, %s2318_s14, %s2319_s19  }
 0x1a9 PF: > { %p2181_p5 = scmp.ge.s32.totalorder %s2314_s9, 2  ;;  %s2091_s20 = sand.u32 1, %s2302_s6  }
 0x1aa   : > { %s2092_s21 = scalar_lea.sflag [#allocation4], %s2091_s20 }
 0x1ab   : > { %p2177_p7 = pnand %p2181_p5, %p2379_p11 }
 0x1ad   : > { %p2178_p8 = pneg %p2177_p7 }
 0x1af   : > { %2297 = dma.done.wait (%p2178_p8), %s2092_s21, 40960  }
 0x1b0   : > { %2299 = vsyncadd (%p2178_p8), %s2092_s21, 4294926336  ;;  %p14_p9 = scmp.ge.s32.totalorder %s2355_s12, 7   ;;  %s3102_s6 = smov %s2306_s7 }
 0x1b1   : > { %s3103_s7 = smov %s2310_s8  ;;  %s3104_s8 = smov %s2367_s15 }
 0x1b2   : > { %s3105_s9 = smov %s2355_s12  ;;  %16 = sbr.rel (!%p14_p9) target bundleno = 5 (0x5), region = 69 }
 0x1b7   :  { %2098 = vsyncpa [#allocation3], 1 }
 0x1b8   :  { %2100 = vsyncpa [#allocation3 + $0x1], 1 }
 0x1b9   :  { %2101 = vsyncpa [#allocation4], 1 }
 0x1ba   :  { %2103 = vsyncpa [#allocation4 + $0x1], 1 }

</bundles_post_ra>
